<compile_context>
chip_gen: v6e
topology: v6e:2x2x1
jax: 0.10.0
libtpu: 0.0.40
codegen_flags: <defaults>
</compile_context>

<pallas_src>
import functools

import jax
import jax.numpy as jnp
from jax import lax
from jax.experimental import pallas as pl
from jax.experimental.pallas import tpu as pltpu

LANE = 128
SUBLANE = 8


def _round_up(n, m):
    return ((n + m - 1) // m) * m


def _fused_mlp_ln_kernel(sid_ref, x_ref, w1_ref, w2_ref, p_ref, o_ref, *, hidden, h_pad):
    """One row tile: ReLU(x @ W1 + b1) @ W2 + b2, then LayerNorm over the real
    `hidden` features (features are zero-padded to h_pad lanes)."""
    del sid_ref  # only consumed by the index_maps (weight-set selection)

    x = x_ref[...]
    w1 = w1_ref[...]
    w2 = w2_ref[...]
    params = p_ref[...].astype(jnp.float32)
    b1 = params[0:1, :]
    b2 = params[1:2, :]
    gamma = params[2:3, :]
    beta = params[3:4, :]

    # Linear 1 + ReLU (MXU, f32 accumulate).
    h = jnp.dot(x, w1, preferred_element_type=jnp.float32) + b1
    h = jnp.maximum(h, 0.0)

    # Linear 2 (cast back to the matmul operand dtype, e.g. bf16 on v6e/v7x).
    y = jnp.dot(h.astype(w2.dtype), w2, preferred_element_type=jnp.float32) + b2

    # LayerNorm over the real feature width only (padded lanes are masked out),
    # eps = 1e-5 (PyTorch default), all in f32.
    if hidden == h_pad:
        mean = jnp.mean(y, axis=-1, keepdims=True)
        centered = y - mean
        var = jnp.mean(centered * centered, axis=-1, keepdims=True)
    else:
        mask = (lax.broadcasted_iota(jnp.int32, (1, h_pad), 1) < hidden).astype(jnp.float32)
        inv_h = 1.0 / float(hidden)
        mean = jnp.sum(y * mask, axis=-1, keepdims=True) * inv_h
        centered = (y - mean) * mask
        var = jnp.sum(centered * centered, axis=-1, keepdims=True) * inv_h

    y_norm = centered * lax.rsqrt(var + 1e-5)
    o_ref[...] = (y_norm * gamma + beta).astype(o_ref.dtype)


def fused_encoder_mlp_layernorm(x_node, x_edge, node_params, edge_params, *,
                                row_tile=512, matmul_dtype=jnp.float32):
    """Runs both (node and edge) MLP+LayerNorm embeddings in one pallas_call.

    Rows of x_node and x_edge are packed into one [rows, in_pad] slab; a
    scalar-prefetch array gives each row tile the index (0=node, 1=edge) of the
    stacked weight set to use.
    """
    hidden = node_params["w1"].shape[1]
    assert edge_params["w1"].shape[1] == hidden

    h_pad = _round_up(hidden, LANE)                       # lane-dense output width
    node_dim = x_node.shape[1]
    edge_dim = x_edge.shape[1]
    in_pad = _round_up(max(node_dim, edge_dim), SUBLANE)  # shared, sublane-aligned K

    n_node, n_edge = x_node.shape[0], x_edge.shape[0]
    n_node_pad = _round_up(max(n_node, 1), row_tile)
    n_edge_pad = _round_up(max(n_edge, 1), row_tile)
    total_rows = n_node_pad + n_edge_pad

    # Packed input slab: node rows first, then edge rows; zero padded.
    X = jnp.zeros((total_rows, in_pad), matmul_dtype)
    X = X.at[:n_node, :node_dim].set(x_node.astype(matmul_dtype))
    X = X.at[n_node_pad:n_node_pad + n_edge, :edge_dim].set(x_edge.astype(matmul_dtype))

    def pad_w1(w):
        return jnp.zeros((in_pad, h_pad), matmul_dtype).at[:w.shape[0], :hidden].set(
            w.astype(matmul_dtype))

    def pad_w2(w):
        return jnp.zeros((h_pad, h_pad), matmul_dtype).at[:hidden, :hidden].set(
            w.astype(matmul_dtype))

    def pack_vecs(p):  # rows: b1, b2, gamma, beta
        v = jnp.stack([p["b1"], p["b2"], p["gamma"], p["beta"]]).astype(jnp.float32)
        return jnp.zeros((4, h_pad), jnp.float32).at[:, :hidden].set(v)

    W1s = jnp.stack([pad_w1(node_params["w1"]), pad_w1(edge_params["w1"])])   # (2, in_pad, h_pad)
    W2s = jnp.stack([pad_w2(node_params["w2"]), pad_w2(edge_params["w2"])])   # (2, h_pad, h_pad)
    Ps = jnp.stack([pack_vecs(node_params), pack_vecs(edge_params)])          # (2, 4, h_pad)

    n_tiles = total_rows // row_tile
    node_tiles = n_node_pad // row_tile
    # Which weight set each row tile uses (0 = node, 1 = edge).
    set_ids = (jnp.arange(n_tiles, dtype=jnp.int32) >= node_tiles).astype(jnp.int32)

    kernel = functools.partial(_fused_mlp_ln_kernel, hidden=hidden, h_pad=h_pad)

    out = pl.pallas_call(
        kernel,
        out_shape=jax.ShapeDtypeStruct((total_rows, h_pad), jnp.float32),
        grid_spec=pltpu.PrefetchScalarGridSpec(
            num_scalar_prefetch=1,
            grid=(n_tiles,),
            in_specs=[
                # x row tile
                pl.BlockSpec((row_tile, in_pad), lambda i, sid: (i, 0)),
                # W1 / W2 / packed params: weight set chosen via scalar prefetch
                pl.BlockSpec((None, in_pad, h_pad), lambda i, sid: (sid[i], 0, 0)),
                pl.BlockSpec((None, h_pad, h_pad), lambda i, sid: (sid[i], 0, 0)),
                pl.BlockSpec((None, 4, h_pad), lambda i, sid: (sid[i], 0, 0)),
            ],
            out_specs=pl.BlockSpec((row_tile, h_pad), lambda i, sid: (i, 0)),
        ),
        compiler_params=pltpu.CompilerParams(
            dimension_semantics=("parallel",),  # independent row tiles -> megacore on v7x
        ),
    )(set_ids, X, W1s, W2s, Ps)

    h_node = out[:n_node, :hidden]
    h_edge = out[n_node_pad:n_node_pad + n_edge, :hidden]
    return h_node, h_edge


def encoder_forward(data, node_params, edge_params, *, row_tile=512,
                    matmul_dtype=jnp.float32):
    """MGN Encoder forward: returns `data` (a dict) with h_node / h_edge attached."""
    h_node, h_edge = fused_encoder_mlp_layernorm(
        data["x"], data["edge_attr"], node_params, edge_params,
        row_tile=row_tile, matmul_dtype=matmul_dtype)
    out = dict(data)
    out["h_node"] = h_node
    out["h_edge"] = h_edge
    return out


def init_mlp_ln_params(key, in_dim, hidden, dtype=jnp.float32):
    """Deterministic synthetic params for Linear(in->H), Linear(H->H), LayerNorm(H)."""
    k1, k2, k3, k4 = jax.random.split(key, 4)
    scale1 = 1.0 / jnp.sqrt(jnp.asarray(in_dim, jnp.float32))
    scale2 = 1.0 / jnp.sqrt(jnp.asarray(hidden, jnp.float32))
    return {
        "w1": (jax.random.normal(k1, (in_dim, hidden), jnp.float32) * scale1).astype(dtype),
        "b1": (jax.random.normal(k2, (hidden,), jnp.float32) * 0.01).astype(dtype),
        "w2": (jax.random.normal(k3, (hidden, hidden), jnp.float32) * scale2).astype(dtype),
        "b2": (jax.random.normal(k4, (hidden,), jnp.float32) * 0.01).astype(dtype),
        "gamma": jnp.ones((hidden,), dtype),
        "beta": jnp.zeros((hidden,), dtype),
    }


def _reference(x, p):
    """Plain-JAX f32 reference for correctness checks."""
    h = jnp.maximum(x @ p["w1"] + p["b1"], 0.0)
    y = h @ p["w2"] + p["b2"]
    mean = jnp.mean(y, axis=-1, keepdims=True)
    var = jnp.mean((y - mean) ** 2, axis=-1, keepdims=True)
    return (y - mean) / jnp.sqrt(var + 1e-5) * p["gamma"] + p["beta"]


if __name__ == "__main__":
    key = jax.random.PRNGKey(0)
    k_node_x, k_edge_x, k_node_p, k_edge_p = jax.random.split(key, 4)

    # Small synthetic graph (PyG Data replaced by a dict).
    num_nodes, num_edges = 64, 128
    node_dim, edge_dim, hidden = 8, 4, 32

    data = {
        "x": jax.random.normal(k_node_x, (num_nodes, node_dim), jnp.float32),
        "edge_attr": jax.random.normal(k_edge_x, (num_edges, edge_dim), jnp.float32),
    }
    node_params = init_mlp_ln_params(k_node_p, node_dim, hidden)
    edge_params = init_mlp_ln_params(k_edge_p, edge_dim, hidden)

    # f32 path (exact match to the PyTorch-style reference).
    out = encoder_forward(data, node_params, edge_params)
    jax.block_until_ready(out["h_node"])
    jax.block_until_ready(out["h_edge"])

    ref_node = _reference(data["x"], node_params)
    ref_edge = _reference(data["edge_attr"], edge_params)
    assert out["h_node"].shape == (num_nodes, hidden)
    assert out["h_edge"].shape == (num_edges, hidden)
    assert jnp.allclose(out["h_node"], ref_node, atol=1e-4, rtol=1e-4)
    assert jnp.allclose(out["h_edge"], ref_edge, atol=1e-4, rtol=1e-4)

    # bf16-matmul path (v6e/v7x perf option): halves x/weight DMA bytes, 2x MXU rate.
    out_bf16 = encoder_forward(data, node_params, edge_params, matmul_dtype=jnp.bfloat16)
    jax.block_until_ready(out_bf16["h_node"])
    jax.block_until_ready(out_bf16["h_edge"])
    assert jnp.allclose(out_bf16["h_node"], ref_node, atol=1e-1, rtol=1e-1)
    assert jnp.allclose(out_bf16["h_edge"], ref_edge, atol=1e-1, rtol=1e-1)

    print("KERNEL_OK")
</pallas_src>

<mosaic_0001>
module attributes {stable_mosaic.version = 11 : i64} {
  func.func @_fused_mlp_ln_kernel(%arg0: i32, %arg1: memref<2xi32, #tpu.memory_space<smem>>, %arg2: memref<512x8xf32, #tpu.memory_space<vmem>>, %arg3: memref<1x8x128xf32, #tpu.memory_space<vmem>>, %arg4: memref<1x128x128xf32, #tpu.memory_space<vmem>>, %arg5: memref<1x4x128xf32, #tpu.memory_space<vmem>>, %arg6: memref<512x128xf32, #tpu.memory_space<vmem>>) attributes {dimension_semantics = [#tpu.dimension_semantics<parallel>], iteration_bounds = array<i64: 2>, scalar_prefetch = 1 : i64, scratch_operands = 0 : i64, tpu.core_type = #tpu.core_type<tc>, window_params = [{transform_indices = @transform_0, window_bounds = array<i64: 512, 8>}, {transform_indices = @transform_1, window_bounds = array<i64: 1, 8, 128>}, {transform_indices = @transform_2, window_bounds = array<i64: 1, 128, 128>}, {transform_indices = @transform_3, window_bounds = array<i64: 1, 4, 128>}, {transform_indices = @transform_4, window_bounds = array<i64: 512, 128>}]} {
    %c0 = arith.constant 0 : index
    %c0_0 = arith.constant 0 : index
    %0 = vector.load %arg2[%c0, %c0_0] : memref<512x8xf32, #tpu.memory_space<vmem>>, vector<512x8xf32>
    %c0_1 = arith.constant 0 : index
    %c0_2 = arith.constant 0 : index
    %c0_3 = arith.constant 0 : index
    %1 = vector.load %arg3[%c0_1, %c0_2, %c0_3] : memref<1x8x128xf32, #tpu.memory_space<vmem>>, vector<1x8x128xf32>
    %2 = vector.shape_cast %1 : vector<1x8x128xf32> to vector<8x128xf32>
    %c0_4 = arith.constant 0 : index
    %c0_5 = arith.constant 0 : index
    %c0_6 = arith.constant 0 : index
    %3 = vector.load %arg4[%c0_4, %c0_5, %c0_6] : memref<1x128x128xf32, #tpu.memory_space<vmem>>, vector<1x128x128xf32>
    %4 = vector.shape_cast %3 : vector<1x128x128xf32> to vector<128x128xf32>
    %c0_7 = arith.constant 0 : index
    %c0_8 = arith.constant 0 : index
    %c0_9 = arith.constant 0 : index
    %5 = vector.load %arg5[%c0_7, %c0_8, %c0_9] : memref<1x4x128xf32, #tpu.memory_space<vmem>>, vector<1x4x128xf32>
    %6 = vector.shape_cast %5 : vector<1x4x128xf32> to vector<4x128xf32>
    %7 = vector.extract_strided_slice %6 {offsets = [0, 0], sizes = [1, 128], strides = [1, 1]} : vector<4x128xf32> to vector<1x128xf32>
    %8 = vector.extract_strided_slice %6 {offsets = [1, 0], sizes = [1, 128], strides = [1, 1]} : vector<4x128xf32> to vector<1x128xf32>
    %9 = vector.extract_strided_slice %6 {offsets = [2, 0], sizes = [1, 128], strides = [1, 1]} : vector<4x128xf32> to vector<1x128xf32>
    %10 = vector.extract_strided_slice %6 {offsets = [3, 0], sizes = [1, 128], strides = [1, 1]} : vector<4x128xf32> to vector<1x128xf32>
    %cst = arith.constant dense<0.000000e+00> : vector<512x128xf32>
    %11 = tpu.matmul %0, %2, %cst {dimension_numbers = #tpu.dot_dimension_numbers<[1], [0], [0], [1], [0, 0, 1, 1], [], []>} : vector<512x8xf32>, vector<8x128xf32>, vector<512x128xf32> -> vector<512x128xf32>
    %12 = vector.broadcast %7 : vector<1x128xf32> to vector<512x128xf32>
    %13 = arith.addf %11, %12 : vector<512x128xf32>
    %cst_10 = arith.constant 0.000000e+00 : f32
    %14 = vector.broadcast %cst_10 : f32 to vector<512x128xf32>
    %15 = arith.maximumf %13, %14 : vector<512x128xf32>
    %cst_11 = arith.constant dense<0.000000e+00> : vector<512x128xf32>
    %16 = tpu.matmul %15, %4, %cst_11 {dimension_numbers = #tpu.dot_dimension_numbers<[1], [0], [0], [1], [0, 0, 1, 1], [], []>} : vector<512x128xf32>, vector<128x128xf32>, vector<512x128xf32> -> vector<512x128xf32>
    %17 = vector.broadcast %8 : vector<1x128xf32> to vector<512x128xf32>
    %18 = arith.addf %16, %17 : vector<512x128xf32>
    %19 = tpu.iota {dimensions = array<i32: 1>} : vector<1x128xi32>
    %c32_i32 = arith.constant 32 : i32
    %20 = vector.broadcast %c32_i32 : i32 to vector<1x128xi32>
    %21 = arith.cmpi slt, %19, %20 : vector<1x128xi32>
    %22 = arith.extui %21 : vector<1x128xi1> to vector<1x128xi32>
    %23 = arith.sitofp %22 : vector<1x128xi32> to vector<1x128xf32>
    %24 = vector.broadcast %23 : vector<1x128xf32> to vector<512x128xf32>
    %25 = arith.mulf %18, %24 : vector<512x128xf32>
    %cst_12 = arith.constant dense<0.000000e+00> : vector<512xf32>
    %26 = vector.multi_reduction <add>, %25, %cst_12 [1] : vector<512x128xf32> to vector<512xf32>
    %27 = vector.shape_cast %26 : vector<512xf32> to vector<512x1xf32>
    %cst_13 = arith.constant 3.125000e-02 : f32
    %28 = vector.broadcast %cst_13 : f32 to vector<512x1xf32>
    %29 = arith.mulf %27, %28 : vector<512x1xf32>
    %30 = vector.broadcast %29 : vector<512x1xf32> to vector<512x128xf32>
    %31 = arith.subf %18, %30 : vector<512x128xf32>
    %32 = vector.broadcast %23 : vector<1x128xf32> to vector<512x128xf32>
    %33 = arith.mulf %31, %32 : vector<512x128xf32>
    %34 = arith.mulf %33, %33 : vector<512x128xf32>
    %cst_14 = arith.constant dense<0.000000e+00> : vector<512xf32>
    %35 = vector.multi_reduction <add>, %34, %cst_14 [1] : vector<512x128xf32> to vector<512xf32>
    %36 = vector.shape_cast %35 : vector<512xf32> to vector<512x1xf32>
    %cst_15 = arith.constant 3.125000e-02 : f32
    %37 = vector.broadcast %cst_15 : f32 to vector<512x1xf32>
    %38 = arith.mulf %36, %37 : vector<512x1xf32>
    %cst_16 = arith.constant 9.99999974E-6 : f32
    %39 = vector.broadcast %cst_16 : f32 to vector<512x1xf32>
    %40 = arith.addf %38, %39 : vector<512x1xf32>
    %41 = math.rsqrt %40 : vector<512x1xf32>
    %42 = vector.broadcast %41 : vector<512x1xf32> to vector<512x128xf32>
    %43 = arith.mulf %33, %42 : vector<512x128xf32>
    %44 = vector.broadcast %9 : vector<1x128xf32> to vector<512x128xf32>
    %45 = arith.mulf %43, %44 : vector<512x128xf32>
    %46 = vector.broadcast %10 : vector<1x128xf32> to vector<512x128xf32>
    %47 = arith.addf %45, %46 : vector<512x128xf32>
    %c0_17 = arith.constant 0 : index
    %c0_18 = arith.constant 0 : index
    %48 = vector.load %arg6[%c0_17, %c0_18] : memref<512x128xf32, #tpu.memory_space<vmem>>, vector<512x128xf32>
    tpu.vector_store %arg6[%c0_17, %c0_18], %47 {strides = array<i32>} : memref<512x128xf32, #tpu.memory_space<vmem>>, vector<512x128xf32>,
    return
  }
  func.func @transform_0(%arg0: i32, %arg1: memref<2xi32, #tpu.memory_space<smem>>) -> (i32, i32) {
    %c0_i32 = arith.constant 0 : i32
    %c0_i32_0 = arith.constant 0 : i32
    return %arg0, %c0_i32 : i32, i32
  }
  func.func @transform_1(%arg0: i32, %arg1: memref<2xi32, #tpu.memory_space<smem>>) -> (i32, i32, i32) {
    %0 = arith.index_cast %arg0 : i32 to index
    %1 = memref.load %arg1[%0] : memref<2xi32, #tpu.memory_space<smem>>
    %c0_i32 = arith.constant 0 : i32
    %c0_i32_0 = arith.constant 0 : i32
    %c0_i32_1 = arith.constant 0 : i32
    return %1, %c0_i32, %c0_i32_0 : i32, i32, i32
  }
  func.func @transform_2(%arg0: i32, %arg1: memref<2xi32, #tpu.memory_space<smem>>) -> (i32, i32, i32) {
    %0 = arith.index_cast %arg0 : i32 to index
    %1 = memref.load %arg1[%0] : memref<2xi32, #tpu.memory_space<smem>>
    %c0_i32 = arith.constant 0 : i32
    %c0_i32_0 = arith.constant 0 : i32
    %c0_i32_1 = arith.constant 0 : i32
    return %1, %c0_i32, %c0_i32_0 : i32, i32, i32
  }
  func.func @transform_3(%arg0: i32, %arg1: memref<2xi32, #tpu.memory_space<smem>>) -> (i32, i32, i32) {
    %0 = arith.index_cast %arg0 : i32 to index
    %1 = memref.load %arg1[%0] : memref<2xi32, #tpu.memory_space<smem>>
    %c0_i32 = arith.constant 0 : i32
    %c0_i32_0 = arith.constant 0 : i32
    %c0_i32_1 = arith.constant 0 : i32
    return %1, %c0_i32, %c0_i32_0 : i32, i32, i32
  }
  func.func @transform_4(%arg0: i32, %arg1: memref<2xi32, #tpu.memory_space<smem>>) -> (i32, i32) {
    %c0_i32 = arith.constant 0 : i32
    %c0_i32_0 = arith.constant 0 : i32
    return %arg0, %c0_i32 : i32, i32
  }
}

</mosaic_0001>

<bundles_post_ra>
// kernel: tpu_custom_call.1
= control target key start
LH: loop header
LB: loop body
LE: loop exit
PB: predicated region body
PF: predicated region fallthrough
CT: control target
= control target key end

     0   :  { %s4637_s0 = inlined_call_operand.vmem [shape: s32[2], index: 0, kind: input, shape index: {}]   ;;  %s4638_s1 = inlined_call_operand.vmem [shape: f32[1024,8], index: 1, kind: input, shape index: {}]   ;;  %s4639_s2 = inlined_call_operand.vmem [shape: f32[2,8,128], index: 2, kind: input, shape index: {}]   ;;  %s4640_s3 = inlined_call_operand.vmem [shape: f32[2,128,128], index: 3, kind: input, shape index: {}]   ;;  %s4641_s4 = inlined_call_operand.vmem [shape: f32[2,4,128], index: 4, kind: input, shape index: {}]   ;;  %s4642_s5 = inlined_call_operand.hbm [shape: f32[1024,128], index: 5, kind: output, shape index: {}]  }
   0x1   :  { %s10_s20 = sshll.u32 %s4637_s0, 4  ;;  %s11_s20 = int_to_ptr.vmem [resolvable:$true] %s10_s20 }
   0x2   :  { %s3205_s21 = scalar_lea.vmem %s11_s20, 16  ;;  %p3210_p1 = scmp.lt.s32.totalorder %s11_s20, %s11_s20 }
   0x3   :  { %p3206_p0 = scmp.ne.s32.totalorder %s11_s20, %s3205_s21  ;;  %p3211_p2 = scmp.lt.s32.totalorder %s3205_s21, %s3205_s21 }
   0x5   :  { %p3212_p3 = por %p3211_p2, %p3210_p1 }
   0x7   :  { %p3213_p4 = pnand %p3212_p3, %p3206_p0 }
   0x9   :  { %3216 = shalt.err (!%p3213_p4)  }
   0xa   :  { %s3281_s22 = smov [#allocation3]  }
   0xb   :  { %13 = dma.vmem_to_smem %s11_s20, 16, %s3281_s22, [#allocation2] }
   0xc   :  { %3259 = dma.done.wait [#allocation2], 16 }
   0xd   :  { %3260 = vsyncadd [#allocation2], 4294967280 }
   0xe   :  { %15 = sfence }
   0xf   :  { %16 = vsyncpa [#allocation5], 0 }
  0x10   :  { %18 = vsyncpa [#allocation5 + $0x1], 0  ;;  %s3319_s23 = smov 0   ;;  %s3321_s24 = smov 0  }
  0x11   :  { %s3323_s0 = smov 0   ;;  %s3325_s25 = smov 0  }
  0x12 LB: > { %s3340_s26 = sadd.s32 4294967295, %s3279_s25   ;;  %s2547_s27 = sadd.s32 4294967294, %s3279_s25   ;;  %s3279_s25 = sphi %s3325_s25, %s4754_s25   ;;  %s3275_s0 = sphi %s3323_s0, %s4753_s0   ;;  %s3271_s24 = sphi %s3321_s24, %s4752_s24   ;;  %s3267_s23 = sphi %s3319_s23, %s4751_s23  }
  0x13   : > { %s3344_s28 = sadd.s32 1, %s3279_s25   ;;  %s141_s29 = sadd.s32 1, %s3275_s0 }
  0x14   : > { %s138_s30 = ssub.s32 %s3279_s25, %s3344_s28  ;;  %p151_p5 = scmp.ne.s32.totalorder %s3275_s0, %s3271_s24 }
  0x15   : > { %p139_p6 = scmp.eq.s32.totalorder %s138_s30, 0  ;;  %p152_p7 = scmp.eq.s32.totalorder %s3340_s26, 1 }
  0x16   : > { %p157_p8 = scmp.ne.s32.totalorder %s3271_s24, %s3267_s23  ;;  %p158_p9 = scmp.eq.s32.totalorder %s2547_s27, 1 }
  0x17   : > { %s3355_s6 = scalar_select %p139_p6, %s3275_s0, %s141_s29  }
  0x18   : > { %p3357_p10 = por %p152_p7, %p151_p5  ;;  %p3361_p11 = por %p158_p9, %p157_p8 }
  0x19   : > { %p2550_p12 = scmp.ge.s32.totalorder %s3279_s25, 1  ;;  %p213_p13 = scmp.lt.s32.totalorder %s3279_s25, 3 }
  0x1b   : > { %p214_p0 = pnand %p2550_p12, %p213_p13 }
  0x1d   : > { %217 = sbr.rel (%p214_p0) target bundleno = 896 (0x380), region = 36 }
  0x22   : > { %s261_s9 = sld [smem:[#allocation3 + %s3340_s26]]  ;;  %s2552_s10 = sshll.u32 %s3340_s26, 6  ;;  %vm367_vm0 = vcmask 64512  }
  0x23   : > { %p256_p1 = scmp.lt.s32.totalorder %s2552_s10, 127  ;;  %s267_s11 = sld [smem:[#allocation3 + %s3340_s26]] }
  0x24   : > { %s274_s29 = sld [smem:[#allocation3 + %s3340_s26]]  ;;  %s3283_s21 = smov [#allocation4]  }
  0x25   : > { %s4756_s10 = smov (!%p256_p1, %s2552_s10), 127  ;;  %s3221_s22 = sshll.u32 %s3283_s21, 4  ;;  %s3222_s22 = int_to_ptr.vmem [resolvable:$false] %s3221_s22 }
  0x26   : > { %s2553_s12 = sshll.u32 %s4756_s10, 3 }
  0x27   : > { %s3373_s15 = scalar_lea.vmem %s4638_s1, %s2553_s12  ;;  %s252_s12 = sand.u32 1, %s3271_s24  }
  0x28   : > { %p262_p2 = scmp.lt.s32.totalorder %s261_s9, 1  ;;  %v281_v0 = vld [vmem:[%s3373_s15] sm:$0xff]  ;;  %v282_v2 = vld [vmem:[%s3373_s15 + $0x8] sm:$0xff]  ;;  %v283_v3 = vld [vmem:[%s3373_s15 + $0x10] sm:$0xff]  ;;  %s2551_s13 = sshll.u32 %s252_s12, 9 }
  0x29   : > { %p268_p3 = scmp.lt.s32.totalorder %s267_s11, 1  ;;  %2777 = vmatprep.mubr.msk.f32.mxu0 %vm367_vm0, %v281_v0  ;;  %v284_v4 = vld [vmem:[%s3373_s15 + $0x18] sm:$0xff]  ;;  %v285_v5 = vld [vmem:[%s3373_s15 + $0x20] sm:$0xff]  ;;  %v286_v7 = vld [vmem:[%s3373_s15 + $0x28] sm:$0xff]  ;;  %s4333_s14 = scalar_lea.vmem [#allocation4], %s2551_s13 }
  0x2a   : > { %s4758_s9 = smov (!%p262_p2, %s261_s9), 1  ;;  %v287_v8 = vld [vmem:[%s3373_s15 + $0x30] sm:$0xff]  ;;  %v288_v11 = vld [vmem:[%s3373_s15 + $0x38] sm:$0xff]  ;;  %v289_v13 = vld [vmem:[%s3373_s15 + $0x40] sm:$0xff]  ;;  %p275_p4 = scmp.lt.s32.totalorder %s274_s29, 1 }
  0x2b   : > { %s4760_s11 = smov (!%p268_p3, %s267_s11), 1  ;;  %s2554_s16 = sshll.u32 %s4758_s9, 3  ;;  %v290_v15 = vld [vmem:[%s3373_s15 + $0x48] sm:$0xff]  ;;  %v291_v17 = vld [vmem:[%s3373_s15 + $0x50] sm:$0xff]  ;;  %v292_v19 = vld [vmem:[%s3373_s15 + $0x58] sm:$0xff] }
  0x2c   : > { %s265_s19 = scalar_lea.vmem %s4639_s2, %s2554_s16  ;;  %s2628_s20 = sshll.u32 %s4760_s11, 7  ;;  %v293_v21 = vld [vmem:[%s3373_s15 + $0x60] sm:$0xff]  ;;  %v294_v23 = vld [vmem:[%s3373_s15 + $0x68] sm:$0xff]  ;;  %v295_v25 = vld [vmem:[%s3373_s15 + $0x70] sm:$0xff] }
  0x2d   : > { %v345_v1 = vld [vmem:[%s265_s19] sm:$0xff]  ;;  %s3388_s27 = scalar_lea.vmem %s4640_s3, %s2628_s20  ;;  %v296_v27 = vld [vmem:[%s3373_s15 + $0x78] sm:$0xff]  ;;  %v298_v31 = vld [vmem:[%s3373_s15 + $0x88] sm:$0xff]  ;;  %s4762_s29 = smov (!%p275_p4, %s274_s29), 1 }
  0x2e   : > { %2775 = vmatprep.subr.mxu0 %v345_v1  ;;  %v361_v6 = vld [vmem:[%s3388_s27 + $0x78] sm:$0xff]  ;;  %v360_v9 = vld [vmem:[%s3388_s27 + $0x70] sm:$0xff]  ;;  %v359_v10 = vld [vmem:[%s3388_s27 + $0x68] sm:$0xff]  ;;  %s2557_s30 = sshll.u32 %s4762_s29, 2  ;;  %s2449_s16 = sshll.u32 %s4333_s14, 4  ;;  %s4590_s16 = int_to_ptr.vmem [resolvable:$true] %s2449_s16 }
  0x2f   : > { %2776 = vmatpush3.msra.mxu0 %v345_v1  ;;  %3001 = vmatprep.subr.mxu1 %v361_v6  ;;  %v358_v12 = vld [vmem:[%s3388_s27 + $0x60] sm:$0xff]  ;;  %v357_v14 = vld [vmem:[%s3388_s27 + $0x58] sm:$0xff]  ;;  %v356_v16 = vld [vmem:[%s3388_s27 + $0x50] sm:$0xff]  ;;  %s3534_s11 = scalar_lea.vmem %s4641_s4, %s2557_s30  ;;  %s3217_s20 = scalar_lea.vmem %s4590_s16, 8192 }
  0x30   : > { %2778 = vmatmul.mubr.msk.f32.vlgmr.msra.gmra.mxu0 %vm367_vm0, %v282_v2  ;;  %2873 = vmatprep.subr.mxu0 %v361_v6  ;;  %v355_v18 = vld [vmem:[%s3388_s27 + $0x48] sm:$0xff]  ;;  %v354_v20 = vld [vmem:[%s3388_s27 + $0x40] sm:$0xff]  ;;  %v353_v22 = vld [vmem:[%s3388_s27 + $0x38] sm:$0xff]  ;;  %p3218_p5 = scmp.ne.s32.totalorder %s4590_s16, %s3217_s20  ;;  %p3224_p8 = scmp.lt.s32.totalorder %s4590_s16, %s3222_s22 }
  0x31   : > { %2780 = vmatprep.mubr.msk.f32.mxu0 %vm367_vm0, %v283_v3  ;;  %2874 = vmatpush3.msra.mxu0 %v361_v6  ;;  %v352_v24 = vld [vmem:[%s3388_s27 + $0x30] sm:$0xff]  ;;  %v351_v26 = vld [vmem:[%s3388_s27 + $0x28] sm:$0xff]  ;;  %v350_v28 = vld [vmem:[%s3388_s27 + $0x20] sm:$0xff] }
  0x32   : > { %2875 = vmatprep.subr.mxu0 %v360_v9  ;;  %3017 = vmatpush3.msra.mxu1 %v361_v6  ;;  %v297_v29 = vld [vmem:[%s3373_s15 + $0x80] sm:$0xff]  ;;  %v349_v30 = vld [vmem:[%s3388_s27 + $0x18] sm:$0xff]  ;;  %v348_v32 = vld [vmem:[%s3388_s27 + $0x10] sm:$0xff]  ;;  %p3219_p6 = pnand %p3218_p5, %p3357_p10 }
  0x33   : > { %3002 = vmatprep.subr.mxu1 %v360_v9  ;;  %2876 = vmatpush3.msra.mxu0 %v360_v9  ;;  %v299_v33 = vld [vmem:[%s3373_s15 + $0x90] sm:$0xff]  ;;  %v347_v34 = vld [vmem:[%s3388_s27 + $0x8] sm:$0xff]  ;;  %v300_v35 = vld [vmem:[%s3373_s15 + $0x98] sm:$0xff] }
  0x34   : > { %2781 = vmatmul.mubr.msk.f32.gmra.mxu0 %vm367_vm0, %v284_v4  ;;  %2877 = vmatprep.subr.mxu0 %v359_v10  ;;  %v346_v36 = vld [vmem:[%s3388_s27] sm:$0xff]  ;;  %v302_v38 = vld [vmem:[%s3373_s15 + $0xa8] sm:$0xff]  ;;  %v303_v39 = vld [vmem:[%s3373_s15 + $0xb0] sm:$0xff]  ;;  %p3220_p7 = pneg %p3219_p6  ;;  %s3223_s27 = scalar_lea.vmem %s3222_s22, 16384 }
  0x35   : > { %2783 = vmatprep.mubr.msk.f32.mxu0 %vm367_vm0, %v285_v5  ;;  %3018 = vmatpush3.msra.mxu1 %v360_v9  ;;  %v301_v37 = vld [vmem:[%s3373_s15 + $0xa0] sm:$0xff]  ;;  %v304_v40 = vld [vmem:[%s3373_s15 + $0xb8] sm:$0xff]  ;;  %v306_v42 = vld [vmem:[%s3373_s15 + $0xc8] sm:$0xff]  ;;  %p3225_p9 = scmp.lt.s32.totalorder %s3223_s27, %s3217_s20 }
  0x36   : > { %2878 = vmatpush3.msra.mxu0 %v359_v10  ;;  %3003 = vmatprep.subr.mxu1 %v359_v10  ;;  %v305_v41 = vld [vmem:[%s3373_s15 + $0xc0] sm:$0xff]  ;;  %v307_v43 = vld [vmem:[%s3373_s15 + $0xd0] sm:$0xff]  ;;  %v308_v44 = vld [vmem:[%s3373_s15 + $0xd8] sm:$0xff] }
  0x37   : > { %2879 = vmatprep.subr.mxu0 %v358_v12  ;;  %3019 = vmatpush3.msra.mxu1 %v359_v10  ;;  %v309_v45 = vld [vmem:[%s3373_s15 + $0xe0] sm:$0xff]  ;;  %v310_v46 = vld [vmem:[%s3373_s15 + $0xe8] sm:$0xff]  ;;  %v311_v47 = vld [vmem:[%s3373_s15 + $0xf0] sm:$0xff]  ;;  %p3226_p12 = por %p3225_p9, %p3224_p8 }
  0x38   : > { %2784 = vmatmul.mubr.msk.f32.gmra.mxu0 %vm367_vm0, %v286_v7  ;;  %3004 = vmatprep.subr.mxu1 %v358_v12  ;;  %v312_v48 = vld [vmem:[%s3373_s15 + $0xf8] sm:$0xff]  ;;  %v313_v49 = vld [vmem:[%s3373_s15 + $0x100] sm:$0xff]  ;;  %v314_v50 = vld [vmem:[%s3373_s15 + $0x108] sm:$0xff] }
  0x39   : > { %2786 = vmatprep.mubr.msk.f32.mxu0 %vm367_vm0, %v287_v8  ;;  %2880 = vmatpush3.msra.mxu0 %v358_v12  ;;  %v315_v51 = vld [vmem:[%s3373_s15 + $0x110] sm:$0xff]  ;;  %v316_v52 = vld [vmem:[%s3373_s15 + $0x118] sm:$0xff]  ;;  %v317_v53 = vld [vmem:[%s3373_s15 + $0x120] sm:$0xff]  ;;  %p3227_p13 = pnand %p3226_p12, %p3220_p7 }
  0x3a   : > { %2881 = vmatprep.subr.mxu0 %v357_v14  ;;  %3020 = vmatpush3.msra.mxu1 %v358_v12  ;;  %v318_v54 = vld [vmem:[%s3373_s15 + $0x128] sm:$0xff]  ;;  %v319_v55 = vld [vmem:[%s3373_s15 + $0x130] sm:$0xff]  ;;  %v320_v56 = vld [vmem:[%s3373_s15 + $0x138] sm:$0xff] }
  0x3b   : > { %2882 = vmatpush3.msra.mxu0 %v357_v14  ;;  %3005 = vmatprep.subr.mxu1 %v357_v14  ;;  %v321_v57 = vld [vmem:[%s3373_s15 + $0x140] sm:$0xff]  ;;  %v322_v58 = vld [vmem:[%s3373_s15 + $0x148] sm:$0xff]  ;;  %v323_v59 = vld [vmem:[%s3373_s15 + $0x150] sm:$0xff] }
  0x3c   : > { %2787 = vmatmul.mubr.msk.f32.gmra.mxu0 %vm367_vm0, %v288_v11  ;;  %2883 = vmatprep.subr.mxu0 %v356_v16  ;;  %v324_v60 = vld [vmem:[%s3373_s15 + $0x158] sm:$0xff]  ;;  %v325_v61 = vld [vmem:[%s3373_s15 + $0x160] sm:$0xff]  ;;  %v326_v62 = vld [vmem:[%s3373_s15 + $0x168] sm:$0xff] }
  0x3d   : > { %2789 = vmatprep.mubr.msk.f32.mxu0 %vm367_vm0, %v289_v13  ;;  %2884 = vmatpush3.msra.mxu0 %v356_v16  ;;  %v327_v63 = vld [vmem:[%s3373_s15 + $0x170] sm:$0xff]  ;;  %v328_v0 = vld [vmem:[%s3373_s15 + $0x178] sm:$0xff]  ;;  %v329_v1 = vld [vmem:[%s3373_s15 + $0x180] sm:$0xff] }
  0x3e   : > { %2885 = vmatprep.subr.mxu0 %v355_v18  ;;  %3021 = vmatpush3.msra.mxu1 %v357_v14  ;;  %v330_v2 = vld [vmem:[%s3373_s15 + $0x188] sm:$0xff]  ;;  %v331_v3 = vld [vmem:[%s3373_s15 + $0x190] sm:$0xff]  ;;  %v332_v4 = vld [vmem:[%s3373_s15 + $0x198] sm:$0xff] }
  0x3f   : > { %2886 = vmatpush3.msra.mxu0 %v355_v18  ;;  %3006 = vmatprep.subr.mxu1 %v356_v16  ;;  %v333_v5 = vld [vmem:[%s3373_s15 + $0x1a0] sm:$0xff]  ;;  %v334_v6 = vld [vmem:[%s3373_s15 + $0x1a8] sm:$0xff]  ;;  %v335_v7 = vld [vmem:[%s3373_s15 + $0x1b0] sm:$0xff] }
  0x40   : > { %2790 = vmatmul.mubr.msk.f32.gmra.mxu0 %vm367_vm0, %v290_v15  ;;  %2887 = vmatprep.subr.mxu0 %v354_v20  ;;  %v336_v8 = vld [vmem:[%s3373_s15 + $0x1b8] sm:$0xff]  ;;  %v337_v9 = vld [vmem:[%s3373_s15 + $0x1c0] sm:$0xff]  ;;  %v338_v10 = vld [vmem:[%s3373_s15 + $0x1c8] sm:$0xff] }
  0x41   : > { %2792 = vmatprep.mubr.msk.f32.mxu0 %vm367_vm0, %v291_v17  ;;  %2888 = vmatpush3.msra.mxu0 %v354_v20  ;;  %v339_v11 = vld [vmem:[%s3373_s15 + $0x1d0] sm:$0xff]  ;;  %v340_v12 = vld [vmem:[%s3373_s15 + $0x1d8] sm:$0xff]  ;;  %v341_v13 = vld [vmem:[%s3373_s15 + $0x1e0] sm:$0xff]  ;;  %v363_v17 = vlaneseq }
  0x42   : > { %2889 = vmatprep.subr.mxu0 %v353_v22  ;;  %3022 = vmatpush3.msra.mxu1 %v356_v16  ;;  %v342_v14 = vld [vmem:[%s3373_s15 + $0x1e8] sm:$0xff]  ;;  %v343_v15 = vld [vmem:[%s3373_s15 + $0x1f0] sm:$0xff]  ;;  %v344_v16 = vld [vmem:[%s3373_s15 + $0x1f8] sm:$0xff]  ;;  %s2629_s15 = sshll.u32 %s3340_s26, 13  ;;  %s4597_s26 = scalar_lea.sflag [#allocation5], %s252_s12 }
  0x43   : > { %2890 = vmatpush3.msra.mxu0 %v353_v22  ;;  %3007 = vmatprep.subr.mxu1 %v355_v18  ;;  %s4588_s19 = scalar_lea.hbm %s4642_s5, %s2629_s15 }
  0x44   : > { %2793 = vmatmul.mubr.msk.f32.gmra.mxu0 %vm367_vm0, %v292_v19  ;;  %2891 = vmatprep.subr.mxu0 %v352_v24 }
  0x45   : > { %2795 = vmatprep.mubr.msk.f32.mxu0 %vm367_vm0, %v293_v21  ;;  %2892 = vmatpush3.msra.mxu0 %v352_v24 }
  0x46   : > { %2893 = vmatprep.subr.mxu0 %v351_v26  ;;  %3023 = vmatpush3.msra.mxu1 %v355_v18  ;;  %v3529_v18 = vshrl.u32 %v363_v17, 7 }
  0x47   : > { %2894 = vmatpush3.msra.mxu0 %v351_v26  ;;  %3008 = vmatprep.subr.mxu1 %v354_v20 }
  0x48   : > { %2796 = vmatmul.mubr.msk.f32.gmra.mxu0 %vm367_vm0, %v294_v23  ;;  %2895 = vmatprep.subr.mxu0 %v350_v28  ;;  %4681 = vst [vmem:[#allocation8_spill] sm:$0xff] %v3529_v18  ;;  %v365_v19 = vsub.s32 0, %v3529_v18 }
  0x49   : > { %2798 = vmatprep.mubr.msk.f32.mxu0 %vm367_vm0, %v295_v25  ;;  %2896 = vmatpush3.msra.mxu0 %v350_v28 }
  0x4a   : > { %2897 = vmatprep.subr.mxu0 %v349_v30  ;;  %3024 = vmatpush3.msra.mxu1 %v354_v20  ;;  %v3538_v20 = vld [vmem:[%s3534_s11] sm:$0xf] }
  0x4b   : > { %2898 = vmatpush3.msra.mxu0 %v349_v30  ;;  %3009 = vmatprep.subr.mxu1 %v353_v22  ;;  %v3541_v21 = vrot.slane %v3538_v20, %v365_v19 }
  0x4c   : > { %2799 = vmatmul.mubr.msk.f32.gmra.mxu0 %vm367_vm0, %v296_v27  ;;  %2899 = vmatprep.subr.mxu0 %v348_v32 }
  0x4d   : > { %2801 = vmatprep.mubr.msk.f32.mxu0 %vm367_vm0, %v297_v29  ;;  %2900 = vmatpush3.msra.mxu0 %v348_v32 }
  0x4e   : > { %2901 = vmatprep.subr.mxu0 %v347_v34  ;;  %3025 = vmatpush3.msra.mxu1 %v353_v22 }
  0x4f   : > { %2902 = vmatpush3.msra.mxu0 %v347_v34  ;;  %3010 = vmatprep.subr.mxu1 %v352_v24 }
  0x50   : > { %2802 = vmatmul.mubr.msk.f32.gmra.mxu0 %vm367_vm0, %v298_v31  ;;  %2903 = vmatprep.subr.mxu0 %v346_v36 }
  0x51   : > { %2804 = vmatprep.mubr.msk.f32.mxu0 %vm367_vm0, %v299_v33  ;;  %2904 = vmatpush3.msra.mxu0 %v346_v36 }
  0x52   : > { %3026 = vmatpush3.msra.mxu1 %v352_v24 }
  0x53   : > { %3011 = vmatprep.subr.mxu1 %v351_v26 }
  0x54   : > { %2805 = vmatmul.mubr.msk.f32.gmra.mxu0 %vm367_vm0, %v300_v35  ;;  %3027 = vmatpush3.msra.mxu1 %v351_v26 }
  0x55   : > { %2807 = vmatprep.mubr.msk.f32.mxu0 %vm367_vm0, %v301_v37  ;;  %3012 = vmatprep.subr.mxu1 %v350_v28 }
  0x56   : > { %3028 = vmatpush3.msra.mxu1 %v350_v28 }
  0x57   : > { %3013 = vmatprep.subr.mxu1 %v349_v30 }
  0x58   : > { %2808 = vmatmul.mubr.msk.f32.gmra.mxu0 %vm367_vm0, %v302_v38  ;;  %3029 = vmatpush3.msra.mxu1 %v349_v30 }
  0x59   : > { %2810 = vmatprep.mubr.msk.f32.mxu0 %vm367_vm0, %v303_v39  ;;  %3014 = vmatprep.subr.mxu1 %v348_v32 }
  0x5a   : > { %3030 = vmatpush3.msra.mxu1 %v348_v32 }
  0x5b   : > { %3015 = vmatprep.subr.mxu1 %v347_v34 }
  0x5c   : > { %2811 = vmatmul.mubr.msk.f32.gmra.mxu0 %vm367_vm0, %v304_v40  ;;  %3031 = vmatpush3.msra.mxu1 %v347_v34 }
  0x5d   : > { %2813 = vmatprep.mubr.msk.f32.mxu0 %vm367_vm0, %v305_v41  ;;  %3016 = vmatprep.subr.mxu1 %v346_v36 }
  0x5e   : > { %3032 = vmatpush3.msra.mxu1 %v346_v36 }
  0x60   : > { %2814 = vmatmul.mubr.msk.f32.gmra.mxu0 %vm367_vm0, %v306_v42 }
  0x61   : > { %2816 = vmatprep.mubr.msk.f32.mxu0 %vm367_vm0, %v307_v43 }
  0x64   : > { %2817 = vmatmul.mubr.msk.f32.gmra.mxu0 %vm367_vm0, %v308_v44 }
  0x65   : > { %2819 = vmatprep.mubr.msk.f32.mxu0 %vm367_vm0, %v309_v45 }
  0x68   : > { %2820 = vmatmul.mubr.msk.f32.gmra.mxu0 %vm367_vm0, %v310_v46 }
  0x69   : > { %2822 = vmatprep.mubr.msk.f32.mxu0 %vm367_vm0, %v311_v47 }
  0x6c   : > { %2823 = vmatmul.mubr.msk.f32.gmra.mxu0 %vm367_vm0, %v312_v48 }
  0x6d   : > { %2825 = vmatprep.mubr.msk.f32.mxu0 %vm367_vm0, %v313_v49 }
  0x70   : > { %2826 = vmatmul.mubr.msk.f32.gmra.mxu0 %vm367_vm0, %v314_v50 }
  0x71   : > { %2828 = vmatprep.mubr.msk.f32.mxu0 %vm367_vm0, %v315_v51 }
  0x74   : > { %2829 = vmatmul.mubr.msk.f32.gmra.mxu0 %vm367_vm0, %v316_v52 }
  0x75   : > { %2831 = vmatprep.mubr.msk.f32.mxu0 %vm367_vm0, %v317_v53 }
  0x78   : > { %2832 = vmatmul.mubr.msk.f32.gmra.mxu0 %vm367_vm0, %v318_v54 }
  0x79   : > { %2834 = vmatprep.mubr.msk.f32.mxu0 %vm367_vm0, %v319_v55 }
  0x7c   : > { %2835 = vmatmul.mubr.msk.f32.gmra.mxu0 %vm367_vm0, %v320_v56 }
  0x7d   : > { %2837 = vmatprep.mubr.msk.f32.mxu0 %vm367_vm0, %v321_v57 }
  0x80   : > { %2838 = vmatmul.mubr.msk.f32.gmra.mxu0 %vm367_vm0, %v322_v58 }
  0x81   : > { %2840 = vmatprep.mubr.msk.f32.mxu0 %vm367_vm0, %v323_v59 }
  0x84   : > { %2841 = vmatmul.mubr.msk.f32.gmra.mxu0 %vm367_vm0, %v324_v60 }
  0x85   : > { %2843 = vmatprep.mubr.msk.f32.mxu0 %vm367_vm0, %v325_v61 }
  0x88   : > { %2844 = vmatmul.mubr.msk.f32.gmra.mxu0 %vm367_vm0, %v326_v62 }
  0x89   : > { %2846 = vmatprep.mubr.msk.f32.mxu0 %vm367_vm0, %v327_v63 }
  0x8c   : > { %2847 = vmatmul.mubr.msk.f32.gmra.mxu0 %vm367_vm0, %v328_v0 }
  0x8d   : > { %2849 = vmatprep.mubr.msk.f32.mxu0 %vm367_vm0, %v329_v1 }
  0x90   : > { %2850 = vmatmul.mubr.msk.f32.gmra.mxu0 %vm367_vm0, %v330_v2 }
  0x91   : > { %2852 = vmatprep.mubr.msk.f32.mxu0 %vm367_vm0, %v331_v3 }
  0x94   : > { %2853 = vmatmul.mubr.msk.f32.gmra.mxu0 %vm367_vm0, %v332_v4 }
  0x95   : > { %2855 = vmatprep.mubr.msk.f32.mxu0 %vm367_vm0, %v333_v5 }
  0x98   : > { %2856 = vmatmul.mubr.msk.f32.gmra.mxu0 %vm367_vm0, %v334_v6 }
  0x99   : > { %2858 = vmatprep.mubr.msk.f32.mxu0 %vm367_vm0, %v335_v7 }
  0x9c   : > { %2859 = vmatmul.mubr.msk.f32.gmra.mxu0 %vm367_vm0, %v336_v8 }
  0x9d   : > { %2861 = vmatprep.mubr.msk.f32.mxu0 %vm367_vm0, %v337_v9 }
  0xa0   : > { %2862 = vmatmul.mubr.msk.f32.gmra.mxu0 %vm367_vm0, %v338_v10 }
  0xa1   : > { %2864 = vmatprep.mubr.msk.f32.mxu0 %vm367_vm0, %v339_v11 }
  0xa4   : > { %2865 = vmatmul.mubr.msk.f32.gmra.mxu0 %vm367_vm0, %v340_v12 }
  0xa5   : > { %2867 = vmatprep.mubr.msk.f32.mxu0 %vm367_vm0, %v341_v13 }
  0xa8   : > { %2868 = vmatmul.mubr.msk.f32.gmra.mxu0 %vm367_vm0, %v342_v14 }
  0xa9   : > { %2870 = vmatprep.mubr.msk.f32.mxu0 %vm367_vm0, %v343_v15 }
  0xac   : > { %2871 = vmatmul.mubr.msk.f32.gmra.mxu0 %vm367_vm0, %v344_v16 }
  0xf0   : > { %v2779_v22 = vpop.f32.mrf.mxu0 }
  0xf1   : > { %v632_v23 = vadd.f32 %v2779_v22, %v3541_v21 }
  0xf2   : > { %v626_v24 = vpop.f32.mrf.mxu0 }
  0xf3   : > { %v627_v25 = vadd.f32 %v626_v24, %v3541_v21  ;;  %v946_v28 = vmax.f32 %v632_v23, 0.0 }
  0xf4   : > { %v2782_v26 = vpop.f32.mrf.mxu0 }
  0xf5   : > { %v945_v27 = vmax.f32 %v627_v25, 0.0  ;;  %v642_v29 = vadd.f32 %v2782_v26, %v3541_v21 }
  0xf6   : > { %v636_v30 = vpop.f32.mrf.mxu0 }
  0xf7   : > { %v637_v31 = vadd.f32 %v636_v30, %v3541_v21  ;;  %2905 = vmatprep.mubr.f32.mxu0 %v945_v27  ;;  %v948_v35 = vmax.f32 %v642_v29, 0.0 }
  0xf8   : > { %v2785_v32 = vpop.f32.mrf.mxu0  ;;  %2906 = vmatmul.mubr.f32.vlgmr.msra.gmra.mxu0 %v946_v28 }
  0xf9   : > { %v947_v33 = vmax.f32 %v637_v31, 0.0  ;;  %v652_v34 = vadd.f32 %v2785_v32, %v3541_v21 }
  0xfa   : > { %v646_v36 = vpop.f32.mrf.mxu0 }
  0xfb   : > { %v647_v37 = vadd.f32 %v646_v36, %v3541_v21  ;;  %2908 = vmatprep.mubr.f32.mxu0 %v947_v33  ;;  %v950_v38 = vmax.f32 %v652_v34, 0.0 }
  0xfc   : > { %v2788_v39 = vpop.f32.mrf.mxu0  ;;  %2909 = vmatmul.mubr.f32.gmra.mxu0 %v948_v35 }
  0xfd   : > { %v949_v40 = vmax.f32 %v647_v37, 0.0  ;;  %v662_v41 = vadd.f32 %v2788_v39, %v3541_v21 }
  0xfe   : > { %v656_v42 = vpop.f32.mrf.mxu0 }
  0xff   : > { %2911 = vmatprep.mubr.f32.mxu0 %v949_v40  ;;  %v657_v43 = vadd.f32 %v656_v42, %v3541_v21  ;;  %v952_v44 = vmax.f32 %v662_v41, 0.0 }
 0x100   : > { %v2791_v45 = vpop.f32.mrf.mxu0  ;;  %2912 = vmatmul.mubr.f32.gmra.mxu0 %v950_v38 }
 0x101   : > { %v672_v46 = vadd.f32 %v2791_v45, %v3541_v21  ;;  %v951_v47 = vmax.f32 %v657_v43, 0.0 }
 0x102   : > { %v666_v48 = vpop.f32.mrf.mxu0 }
 0x103   : > { %v667_v49 = vadd.f32 %v666_v48, %v3541_v21  ;;  %2914 = vmatprep.mubr.f32.mxu1 %v951_v47  ;;  %v954_v50 = vmax.f32 %v672_v46, 0.0 }
 0x104   : > { %v2794_v51 = vpop.f32.mrf.mxu0  ;;  %2915 = vmatmul.mubr.f32.vlgmr.msra.gmra.mxu1 %v952_v44 }
 0x105   : > { %v953_v52 = vmax.f32 %v667_v49, 0.0  ;;  %v682_v53 = vadd.f32 %v2794_v51, %v3541_v21 }
 0x106   : > { %v676_v54 = vpop.f32.mrf.mxu0 }
 0x107   : > { %v677_v55 = vadd.f32 %v676_v54, %v3541_v21  ;;  %2917 = vmatprep.mubr.f32.mxu1 %v953_v52  ;;  %v956_v56 = vmax.f32 %v682_v53, 0.0 }
 0x108   : > { %v2797_v57 = vpop.f32.mrf.mxu0  ;;  %2918 = vmatmul.mubr.f32.gmra.mxu1 %v954_v50 }
 0x109   : > { %v955_v58 = vmax.f32 %v677_v55, 0.0  ;;  %v692_v59 = vadd.f32 %v2797_v57, %v3541_v21 }
 0x10a   : > { %v686_v60 = vpop.f32.mrf.mxu0 }
 0x10b   : > { %v687_v61 = vadd.f32 %v686_v60, %v3541_v21  ;;  %2920 = vmatprep.mubr.f32.mxu1 %v955_v58  ;;  %v958_v62 = vmax.f32 %v692_v59, 0.0 }
 0x10c   : > { %v2800_v63 = vpop.f32.mrf.mxu0  ;;  %2921 = vmatmul.mubr.f32.gmra.mxu1 %v956_v56 }
 0x10d   : > { %v957_v0 = vmax.f32 %v687_v61, 0.0  ;;  %v702_v1 = vadd.f32 %v2800_v63, %v3541_v21 }
 0x10e   : > { %v696_v2 = vpop.f32.mrf.mxu0 }
 0x10f   : > { %v697_v3 = vadd.f32 %v696_v2, %v3541_v21  ;;  %2923 = vmatprep.mubr.f32.mxu1 %v957_v0  ;;  %v960_v4 = vmax.f32 %v702_v1, 0.0 }
 0x110   : > { %v2803_v5 = vpop.f32.mrf.mxu0  ;;  %2924 = vmatmul.mubr.f32.gmra.mxu1 %v958_v62 }
 0x111   : > { %v959_v6 = vmax.f32 %v697_v3, 0.0  ;;  %v712_v7 = vadd.f32 %v2803_v5, %v3541_v21 }
 0x112   : > { %v706_v8 = vpop.f32.mrf.mxu0 }
 0x113   : > { %v707_v9 = vadd.f32 %v706_v8, %v3541_v21  ;;  %2926 = vmatprep.mubr.f32.mxu1 %v959_v6  ;;  %v962_v10 = vmax.f32 %v712_v7, 0.0 }
 0x114   : > { %v2806_v11 = vpop.f32.mrf.mxu0  ;;  %2927 = vmatmul.mubr.f32.gmra.mxu1 %v960_v4 }
 0x115   : > { %v961_v12 = vmax.f32 %v707_v9, 0.0  ;;  %v722_v13 = vadd.f32 %v2806_v11, %v3541_v21 }
 0x116   : > { %v716_v14 = vpop.f32.mrf.mxu0 }
 0x117   : > { %v717_v15 = vadd.f32 %v716_v14, %v3541_v21  ;;  %2929 = vmatprep.mubr.f32.mxu1 %v961_v12  ;;  %v964_v16 = vmax.f32 %v722_v13, 0.0 }
 0x118   : > { %v2809_v19 = vpop.f32.mrf.mxu0  ;;  %2930 = vmatmul.mubr.f32.gmra.mxu1 %v962_v10 }
 0x119   : > { %v963_v22 = vmax.f32 %v717_v15, 0.0  ;;  %v732_v23 = vadd.f32 %v2809_v19, %v3541_v21 }
 0x11a   : > { %v726_v24 = vpop.f32.mrf.mxu0 }
 0x11b   : > { %v727_v25 = vadd.f32 %v726_v24, %v3541_v21  ;;  %2932 = vmatprep.mubr.f32.mxu1 %v963_v22  ;;  %v966_v26 = vmax.f32 %v732_v23, 0.0 }
 0x11c   : > { %v2812_v27 = vpop.f32.mrf.mxu0  ;;  %2933 = vmatmul.mubr.f32.gmra.mxu1 %v964_v16 }
 0x11d   : > { %v965_v28 = vmax.f32 %v727_v25, 0.0  ;;  %v742_v29 = vadd.f32 %v2812_v27, %v3541_v21 }
 0x11e   : > { %v736_v30 = vpop.f32.mrf.mxu0 }
 0x11f   : > { %v737_v31 = vadd.f32 %v736_v30, %v3541_v21  ;;  %2935 = vmatprep.mubr.f32.mxu1 %v965_v28  ;;  %v968_v32 = vmax.f32 %v742_v29, 0.0 }
 0x120   : > { %v2815_v33 = vpop.f32.mrf.mxu0  ;;  %2936 = vmatmul.mubr.f32.gmra.mxu1 %v966_v26 }
 0x121   : > { %v967_v34 = vmax.f32 %v737_v31, 0.0  ;;  %v752_v35 = vadd.f32 %v2815_v33, %v3541_v21 }
 0x122   : > { %v746_v36 = vpop.f32.mrf.mxu0 }
 0x123   : > { %v747_v37 = vadd.f32 %v746_v36, %v3541_v21  ;;  %2938 = vmatprep.mubr.f32.mxu1 %v967_v34  ;;  %v970_v38 = vmax.f32 %v752_v35, 0.0 }
 0x124   : > { %v2818_v39 = vpop.f32.mrf.mxu0  ;;  %2939 = vmatmul.mubr.f32.gmra.mxu1 %v968_v32 }
 0x125   : > { %v969_v40 = vmax.f32 %v747_v37, 0.0  ;;  %v762_v41 = vadd.f32 %v2818_v39, %v3541_v21 }
 0x126   : > { %v756_v42 = vpop.f32.mrf.mxu0 }
 0x127   : > { %v757_v43 = vadd.f32 %v756_v42, %v3541_v21  ;;  %2941 = vmatprep.mubr.f32.mxu1 %v969_v40  ;;  %v972_v44 = vmax.f32 %v762_v41, 0.0 }
 0x128   : > { %v2821_v45 = vpop.f32.mrf.mxu0  ;;  %2942 = vmatmul.mubr.f32.gmra.mxu1 %v970_v38 }
 0x129   : > { %v971_v46 = vmax.f32 %v757_v43, 0.0  ;;  %v772_v47 = vadd.f32 %v2821_v45, %v3541_v21 }
 0x12a   : > { %v766_v48 = vpop.f32.mrf.mxu0 }
 0x12b   : > { %v767_v49 = vadd.f32 %v766_v48, %v3541_v21  ;;  %2944 = vmatprep.mubr.f32.mxu1 %v971_v46  ;;  %v974_v50 = vmax.f32 %v772_v47, 0.0 }
 0x12c   : > { %v2824_v51 = vpop.f32.mrf.mxu0  ;;  %2945 = vmatmul.mubr.f32.gmra.mxu1 %v972_v44 }
 0x12d   : > { %v973_v52 = vmax.f32 %v767_v49, 0.0  ;;  %v782_v53 = vadd.f32 %v2824_v51, %v3541_v21 }
 0x12e   : > { %v776_v54 = vpop.f32.mrf.mxu0 }
 0x12f   : > { %v777_v55 = vadd.f32 %v776_v54, %v3541_v21  ;;  %2947 = vmatprep.mubr.f32.mxu1 %v973_v52  ;;  %v976_v56 = vmax.f32 %v782_v53, 0.0 }
 0x130   : > { %v2827_v57 = vpop.f32.mrf.mxu0  ;;  %2948 = vmatmul.mubr.f32.gmra.mxu1 %v974_v50 }
 0x131   : > { %v975_v58 = vmax.f32 %v777_v55, 0.0  ;;  %v792_v59 = vadd.f32 %v2827_v57, %v3541_v21 }
 0x132   : > { %v786_v60 = vpop.f32.mrf.mxu0 }
 0x133   : > { %v787_v61 = vadd.f32 %v786_v60, %v3541_v21  ;;  %2950 = vmatprep.mubr.f32.mxu1 %v975_v58  ;;  %v978_v62 = vmax.f32 %v792_v59, 0.0 }
 0x134   : > { %v2830_v63 = vpop.f32.mrf.mxu0  ;;  %2951 = vmatmul.mubr.f32.gmra.mxu1 %v976_v56 }
 0x135   : > { %v977_v0 = vmax.f32 %v787_v61, 0.0  ;;  %v802_v1 = vadd.f32 %v2830_v63, %v3541_v21 }
 0x136   : > { %v796_v2 = vpop.f32.mrf.mxu0 }
 0x137   : > { %v797_v3 = vadd.f32 %v796_v2, %v3541_v21  ;;  %2953 = vmatprep.mubr.f32.mxu1 %v977_v0  ;;  %v980_v4 = vmax.f32 %v802_v1, 0.0 }
 0x138   : > { %v2833_v5 = vpop.f32.mrf.mxu0  ;;  %2954 = vmatmul.mubr.f32.gmra.mxu1 %v978_v62 }
 0x139   : > { %v979_v6 = vmax.f32 %v797_v3, 0.0  ;;  %v812_v7 = vadd.f32 %v2833_v5, %v3541_v21 }
 0x13a   : > { %v806_v8 = vpop.f32.mrf.mxu0 }
 0x13b   : > { %v807_v9 = vadd.f32 %v806_v8, %v3541_v21  ;;  %2956 = vmatprep.mubr.f32.mxu1 %v979_v6  ;;  %v982_v10 = vmax.f32 %v812_v7, 0.0 }
 0x13c   : > { %v2836_v11 = vpop.f32.mrf.mxu0  ;;  %2957 = vmatmul.mubr.f32.gmra.mxu1 %v980_v4 }
 0x13d   : > { %v981_v12 = vmax.f32 %v807_v9, 0.0  ;;  %v822_v13 = vadd.f32 %v2836_v11, %v3541_v21 }
 0x13e   : > { %v816_v14 = vpop.f32.mrf.mxu0 }
 0x13f   : > { %v817_v15 = vadd.f32 %v816_v14, %v3541_v21  ;;  %2959 = vmatprep.mubr.f32.mxu1 %v981_v12  ;;  %v984_v16 = vmax.f32 %v822_v13, 0.0 }
 0x140   : > { %v2839_v19 = vpop.f32.mrf.mxu0  ;;  %2960 = vmatmul.mubr.f32.gmra.mxu1 %v982_v10 }
 0x141   : > { %v983_v22 = vmax.f32 %v817_v15, 0.0  ;;  %v832_v23 = vadd.f32 %v2839_v19, %v3541_v21 }
 0x142   : > { %v826_v24 = vpop.f32.mrf.mxu0 }
 0x143   : > { %v827_v25 = vadd.f32 %v826_v24, %v3541_v21  ;;  %2962 = vmatprep.mubr.f32.mxu1 %v983_v22  ;;  %v986_v26 = vmax.f32 %v832_v23, 0.0 }
 0x144   : > { %v2842_v27 = vpop.f32.mrf.mxu0  ;;  %2963 = vmatmul.mubr.f32.gmra.mxu1 %v984_v16 }
 0x145   : > { %v985_v28 = vmax.f32 %v827_v25, 0.0  ;;  %v842_v29 = vadd.f32 %v2842_v27, %v3541_v21 }
 0x146   : > { %v836_v30 = vpop.f32.mrf.mxu0 }
 0x147   : > { %v837_v31 = vadd.f32 %v836_v30, %v3541_v21  ;;  %2965 = vmatprep.mubr.f32.mxu1 %v985_v28  ;;  %v988_v32 = vmax.f32 %v842_v29, 0.0 }
 0x148   : > { %v2845_v33 = vpop.f32.mrf.mxu0  ;;  %2966 = vmatmul.mubr.f32.gmra.mxu1 %v986_v26 }
 0x149   : > { %v987_v34 = vmax.f32 %v837_v31, 0.0  ;;  %v852_v35 = vadd.f32 %v2845_v33, %v3541_v21 }
 0x14a   : > { %v846_v36 = vpop.f32.mrf.mxu0 }
 0x14b   : > { %v847_v37 = vadd.f32 %v846_v36, %v3541_v21  ;;  %2968 = vmatprep.mubr.f32.mxu1 %v987_v34  ;;  %v990_v38 = vmax.f32 %v852_v35, 0.0  ;;  %v1399_v34 = vand.u32 127, %v363_v17  ;;  %v1011_v35 = vsub.s32 1, %v3529_v18 }
 0x14c   : > { %v2848_v39 = vpop.f32.mrf.mxu0  ;;  %2969 = vmatmul.mubr.f32.gmra.mxu1 %v988_v32 }
 0x14d   : > { %v989_v40 = vmax.f32 %v847_v37, 0.0  ;;  %v862_v41 = vadd.f32 %v2848_v39, %v3541_v21  ;;  %vm1400_vm1 = vcmp.lt.s32.totalorder %v1399_v34, 32  ;;  %v3610_v36 = vrot.slane %v3538_v20, %v1011_v35 }
 0x14e   : > { %v856_v42 = vpop.f32.mrf.mxu0  ;;  %v3282_v37 = vmov 0.0  }
 0x14f   : > { %v857_v43 = vadd.f32 %v856_v42, %v3541_v21  ;;  %2971 = vmatprep.mubr.f32.mxu1 %v989_v40  ;;  %v992_v44 = vmax.f32 %v862_v41, 0.0 }
 0x150   : > { %v2851_v45 = vpop.f32.mrf.mxu0  ;;  %2972 = vmatmul.mubr.f32.gmra.mxu1 %v990_v38  ;;  %v3612_v38 = vsel %vm1400_vm1, 1.0, %v3282_v37 }
 0x151   : > { %v991_v46 = vmax.f32 %v857_v43, 0.0  ;;  %v872_v47 = vadd.f32 %v2851_v45, %v3541_v21 }
 0x152   : > { %v866_v48 = vpop.f32.mrf.mxu0 }
 0x153   : > { %v867_v49 = vadd.f32 %v866_v48, %v3541_v21  ;;  %2974 = vmatprep.mubr.f32.mxu1 %v991_v46  ;;  %v994_v50 = vmax.f32 %v872_v47, 0.0 }
 0x154   : > { %v2854_v51 = vpop.f32.mrf.mxu0  ;;  %2975 = vmatmul.mubr.f32.gmra.mxu1 %v992_v44 }
 0x155   : > { %v993_v52 = vmax.f32 %v867_v49, 0.0  ;;  %v882_v53 = vadd.f32 %v2854_v51, %v3541_v21 }
 0x156   : > { %v876_v54 = vpop.f32.mrf.mxu0 }
 0x157   : > { %v877_v55 = vadd.f32 %v876_v54, %v3541_v21  ;;  %2977 = vmatprep.mubr.f32.mxu1 %v993_v52  ;;  %v996_v56 = vmax.f32 %v882_v53, 0.0 }
 0x158   : > { %v2857_v57 = vpop.f32.mrf.mxu0  ;;  %2978 = vmatmul.mubr.f32.gmra.mxu1 %v994_v50 }
 0x159   : > { %v995_v58 = vmax.f32 %v877_v55, 0.0  ;;  %v892_v59 = vadd.f32 %v2857_v57, %v3541_v21 }
 0x15a   : > { %v886_v60 = vpop.f32.mrf.mxu0 }
 0x15b   : > { %v887_v61 = vadd.f32 %v886_v60, %v3541_v21  ;;  %2980 = vmatprep.mubr.f32.mxu1 %v995_v58  ;;  %v998_v62 = vmax.f32 %v892_v59, 0.0 }
 0x15c   : > { %v2860_v63 = vpop.f32.mrf.mxu0  ;;  %2981 = vmatmul.mubr.f32.gmra.mxu1 %v996_v56 }
 0x15d   : > { %v997_v0 = vmax.f32 %v887_v61, 0.0  ;;  %v902_v1 = vadd.f32 %v2860_v63, %v3541_v21 }
 0x15e   : > { %v896_v2 = vpop.f32.mrf.mxu0 }
 0x15f   : > { %v897_v3 = vadd.f32 %v896_v2, %v3541_v21  ;;  %2983 = vmatprep.mubr.f32.mxu1 %v997_v0  ;;  %v1000_v4 = vmax.f32 %v902_v1, 0.0 }
 0x160   : > { %v2863_v5 = vpop.f32.mrf.mxu0  ;;  %2984 = vmatmul.mubr.f32.gmra.mxu1 %v998_v62 }
 0x161   : > { %v999_v6 = vmax.f32 %v897_v3, 0.0  ;;  %v912_v7 = vadd.f32 %v2863_v5, %v3541_v21 }
 0x162   : > { %v906_v8 = vpop.f32.mrf.mxu0 }
 0x163   : > { %v907_v9 = vadd.f32 %v906_v8, %v3541_v21  ;;  %2986 = vmatprep.mubr.f32.mxu1 %v999_v6  ;;  %v1002_v10 = vmax.f32 %v912_v7, 0.0 }
 0x164   : > { %v2866_v11 = vpop.f32.mrf.mxu0  ;;  %2987 = vmatmul.mubr.f32.gmra.mxu1 %v1000_v4 }
 0x165   : > { %v1001_v12 = vmax.f32 %v907_v9, 0.0  ;;  %v922_v13 = vadd.f32 %v2866_v11, %v3541_v21 }
 0x166   : > { %v916_v14 = vpop.f32.mrf.mxu0 }
 0x167   : > { %v917_v15 = vadd.f32 %v916_v14, %v3541_v21  ;;  %2989 = vmatprep.mubr.f32.mxu1 %v1001_v12  ;;  %v1004_v16 = vmax.f32 %v922_v13, 0.0 }
 0x168   : > { %v2869_v19 = vpop.f32.mrf.mxu0  ;;  %2990 = vmatmul.mubr.f32.gmra.mxu1 %v1002_v10 }
 0x169   : > { %v1003_v22 = vmax.f32 %v917_v15, 0.0  ;;  %v932_v23 = vadd.f32 %v2869_v19, %v3541_v21 }
 0x16a   : > { %v926_v24 = vpop.f32.mrf.mxu0 }
 0x16b   : > { %v927_v25 = vadd.f32 %v926_v24, %v3541_v21  ;;  %2992 = vmatprep.mubr.f32.mxu1 %v1003_v22  ;;  %v1006_v26 = vmax.f32 %v932_v23, 0.0 }
 0x16c   : > { %v2872_v27 = vpop.f32.mrf.mxu0  ;;  %2993 = vmatmul.mubr.f32.gmra.mxu1 %v1004_v16 }
 0x16d   : > { %v1005_v28 = vmax.f32 %v927_v25, 0.0  ;;  %v942_v29 = vadd.f32 %v2872_v27, %v3541_v21 }
 0x16e   : > { %v936_v30 = vpop.f32.mrf.mxu0 }
 0x16f   : > { %v937_v31 = vadd.f32 %v936_v30, %v3541_v21  ;;  %2995 = vmatprep.mubr.f32.mxu1 %v1005_v28  ;;  %v1008_v32 = vmax.f32 %v942_v29, 0.0 }
 0x170   : > { %2996 = vmatmul.mubr.f32.gmra.mxu1 %v1006_v26 }
 0x171   : > { %v1007_v33 = vmax.f32 %v937_v31, 0.0 }
 0x173   : > { %2998 = vmatprep.mubr.f32.mxu1 %v1007_v33 }
 0x174   : > { %2999 = vmatmul.mubr.f32.gmra.mxu1 %v1008_v32 }
 0x1b8   : > { %v2907_v39 = vpop.f32.mrf.mxu0 }
 0x1b9   : > { %v3615_v21 = vadd.f32 %v2907_v39, %v3610_v36 }
 0x1ba   : > { %v1079_v40 = vpop.f32.mrf.mxu0 }
 0x1bb   : > { %v3618_v41 = vadd.f32 %v1079_v40, %v3610_v36  ;;  %v1404_v17 = vmul.f32 %v3612_v38, %v3615_v21 }
 0x1bc   : > { %v2910_v42 = vpop.f32.mrf.mxu0 }
 0x1bd   : > { %v3623_v43 = vadd.f32 %v2910_v42, %v3610_v36  ;;  %1469 = vadd.xlane.f32.xlu0 %v1404_v17  ;;  %v1403_v46 = vmul.f32 %v3612_v38, %v3618_v41 }
 0x1be   : > { %v1089_v20 = vpop.f32.mrf.mxu0 }
 0x1bf   : > { %v3626_v44 = vadd.f32 %v1089_v20, %v3610_v36  ;;  %v1406_v45 = vmul.f32 %v3612_v38, %v3623_v43 }
 0x1c0   : > { %v2913_v47 = vpop.f32.mrf.mxu0 }
 0x1c1   : > { %1473 = vadd.xlane.f32.xlu1 %v1406_v45  ;;  %1467 = vadd.xlane.f32.xlu0 %v1403_v46  ;;  %v3633_v49 = vadd.f32 %v2913_v47, %v3610_v36  ;;  %v1405_v51 = vmul.f32 %v3612_v38, %v3626_v44 }
 0x1c2   : > { %v1099_v48 = vpop.f32.mrf.mxu0 }
 0x1c3   : > { %v3636_v50 = vadd.f32 %v1099_v48, %v3610_v36  ;;  %v1408_v57 = vmul.f32 %v3612_v38, %v3633_v49 }
 0x1c4   : > { %v2916_v52 = vpop.f32.mrf.mxu1 }
 0x1c5   : > { %1471 = vadd.xlane.f32.xlu1 %v1405_v51  ;;  %v1407_v53 = vmul.f32 %v3612_v38, %v3636_v50  ;;  %v3643_v55 = vadd.f32 %v2916_v52, %v3610_v36 }
 0x1c6   : > { %v1109_v54 = vpop.f32.mrf.mxu1 }
 0x1c7   : > { %v3646_v56 = vadd.f32 %v1109_v54, %v3610_v36  ;;  %1475 = vadd.xlane.f32.xlu0 %v1407_v53  ;;  %v1410_v63 = vmul.f32 %v3612_v38, %v3643_v55 }
 0x1c8   : > { %v2919_v58 = vpop.f32.mrf.mxu1 }
 0x1c9   : > { %1477 = vadd.xlane.f32.xlu1 %v1408_v57  ;;  %v1409_v59 = vmul.f32 %v3612_v38, %v3646_v56  ;;  %v3653_v61 = vadd.f32 %v2919_v58, %v3610_v36 }
 0x1ca   : > { %v1119_v60 = vpop.f32.mrf.mxu1 }
 0x1cb   : > { %v3656_v62 = vadd.f32 %v1119_v60, %v3610_v36  ;;  %1479 = vadd.xlane.f32.xlu0 %v1409_v59  ;;  %v1412_v5 = vmul.f32 %v3612_v38, %v3653_v61 }
 0x1cc   : > { %v2922_v0 = vpop.f32.mrf.mxu1 }
 0x1cd   : > { %1481 = vadd.xlane.f32.xlu1 %v1410_v63  ;;  %v1411_v1 = vmul.f32 %v3612_v38, %v3656_v62  ;;  %v3663_v3 = vadd.f32 %v2922_v0, %v3610_v36 }
 0x1ce   : > { %v1129_v2 = vpop.f32.mrf.mxu1 }
 0x1cf   : > { %v3666_v4 = vadd.f32 %v1129_v2, %v3610_v36  ;;  %1483 = vadd.xlane.f32.xlu0 %v1411_v1  ;;  %v1414_v11 = vmul.f32 %v3612_v38, %v3663_v3 }
 0x1d0   : > { %v2925_v6 = vpop.f32.mrf.mxu1 }
 0x1d1   : > { %1485 = vadd.xlane.f32.xlu1 %v1412_v5  ;;  %v1413_v7 = vmul.f32 %v3612_v38, %v3666_v4  ;;  %v3673_v9 = vadd.f32 %v2925_v6, %v3610_v36 }
 0x1d2   : > { %v1139_v8 = vpop.f32.mrf.mxu1 }
 0x1d3   : > { %v3676_v10 = vadd.f32 %v1139_v8, %v3610_v36  ;;  %1487 = vadd.xlane.f32.xlu0 %v1413_v7  ;;  %v1416_v19 = vmul.f32 %v3612_v38, %v3673_v9 }
 0x1d4   : > { %v2928_v12 = vpop.f32.mrf.mxu1 }
 0x1d5   : > { %1489 = vadd.xlane.f32.xlu1 %v1414_v11  ;;  %v1415_v13 = vmul.f32 %v3612_v38, %v3676_v10  ;;  %v3683_v15 = vadd.f32 %v2928_v12, %v3610_v36 }
 0x1d6   : > { %v1149_v14 = vpop.f32.mrf.mxu1 }
 0x1d7   : > { %v3686_v16 = vadd.f32 %v1149_v14, %v3610_v36  ;;  %1491 = vadd.xlane.f32.xlu0 %v1415_v13  ;;  %v1418_v27 = vmul.f32 %v3612_v38, %v3683_v15 }
 0x1d8   : > { %v2931_v22 = vpop.f32.mrf.mxu1 }
 0x1d9   : > { %1493 = vadd.xlane.f32.xlu1 %v1416_v19  ;;  %v1417_v23 = vmul.f32 %v3612_v38, %v3686_v16  ;;  %v3693_v25 = vadd.f32 %v2931_v22, %v3610_v36 }
 0x1da   : > { %v1159_v24 = vpop.f32.mrf.mxu1 }
 0x1db   : > { %v3696_v26 = vadd.f32 %v1159_v24, %v3610_v36  ;;  %1495 = vadd.xlane.f32.xlu0 %v1417_v23  ;;  %v1420_v33 = vmul.f32 %v3612_v38, %v3693_v25 }
 0x1dc   : > { %v2934_v28 = vpop.f32.mrf.mxu1 }
 0x1dd   : > { %1497 = vadd.xlane.f32.xlu1 %v1418_v27  ;;  %v1419_v29 = vmul.f32 %v3612_v38, %v3696_v26  ;;  %v3703_v31 = vadd.f32 %v2934_v28, %v3610_v36 }
 0x1de   : > { %v1169_v30 = vpop.f32.mrf.mxu1 }
 0x1df   : > { %v3706_v32 = vadd.f32 %v1169_v30, %v3610_v36  ;;  %1499 = vadd.xlane.f32.xlu0 %v1419_v29  ;;  %v1422_v17 = vmul.f32 %v3612_v38, %v3703_v31 }
 0x1e0   : > { %v2937_v34 = vpop.f32.mrf.mxu1 }
 0x1e1   : > { %1501 = vadd.xlane.f32.xlu1 %v1420_v33  ;;  %v1421_v35 = vmul.f32 %v3612_v38, %v3706_v32  ;;  %v3713_v39 = vadd.f32 %v2937_v34, %v3610_v36 }
 0x1e2   : > { %v1179_v37 = vpop.f32.mrf.mxu1 }
 0x1e3   : > { %v3716_v40 = vadd.f32 %v1179_v37, %v3610_v36  ;;  %1503 = vadd.xlane.f32.xlu0 %v1421_v35  ;;  %v1424_v48 = vmul.f32 %v3612_v38, %v3713_v39 }
 0x1e4   : > { %v2940_v42 = vpop.f32.mrf.mxu1 }
 0x1e5   : > { %1505 = vadd.xlane.f32.xlu1 %v1422_v17  ;;  %v1423_v20 = vmul.f32 %v3612_v38, %v3716_v40  ;;  %v3723_v46 = vadd.f32 %v2940_v42, %v3610_v36 }
 0x1e6   : > { %v1189_v45 = vpop.f32.mrf.mxu1 }
 0x1e7   : > { %v3726_v47 = vadd.f32 %v1189_v45, %v3610_v36  ;;  %1507 = vadd.xlane.f32.xlu0 %v1423_v20  ;;  %v1426_v58 = vmul.f32 %v3612_v38, %v3723_v46 }
 0x1e8   : > { %v2943_v51 = vpop.f32.mrf.mxu1 }
 0x1e9   : > { %1509 = vadd.xlane.f32.xlu1 %v1424_v48  ;;  %v1425_v52 = vmul.f32 %v3612_v38, %v3726_v47  ;;  %v3733_v54 = vadd.f32 %v2943_v51, %v3610_v36 }
 0x1ea   : > { %v1199_v53 = vpop.f32.mrf.mxu1 }
 0x1eb   : > { %v3736_v57 = vadd.f32 %v1199_v53, %v3610_v36  ;;  %1511 = vadd.xlane.f32.xlu0 %v1425_v52  ;;  %v1428_v2 = vmul.f32 %v3612_v38, %v3733_v54 }
 0x1ec   : > { %v2946_v59 = vpop.f32.mrf.mxu1 }
 0x1ed   : > { %1513 = vadd.xlane.f32.xlu1 %v1426_v58  ;;  %v1427_v60 = vmul.f32 %v3612_v38, %v3736_v57  ;;  %v3743_v0 = vadd.f32 %v2946_v59, %v3610_v36 }
 0x1ee   : > { %v1209_v63 = vpop.f32.mrf.mxu1 }
 0x1ef   : > { %v3746_v1 = vadd.f32 %v1209_v63, %v3610_v36  ;;  %1515 = vadd.xlane.f32.xlu0 %v1427_v60  ;;  %v1430_v12 = vmul.f32 %v3612_v38, %v3743_v0 }
 0x1f0   : > { %v2949_v5 = vpop.f32.mrf.mxu1 }
 0x1f1   : > { %1517 = vadd.xlane.f32.xlu1 %v1428_v2  ;;  %v1429_v6 = vmul.f32 %v3612_v38, %v3746_v1  ;;  %v3753_v8 = vadd.f32 %v2949_v5, %v3610_v36 }
 0x1f2   : > { %v1219_v7 = vpop.f32.mrf.mxu1 }
 0x1f3   : > { %v3756_v11 = vadd.f32 %v1219_v7, %v3610_v36  ;;  %1519 = vadd.xlane.f32.xlu0 %v1429_v6  ;;  %v1432_v24 = vmul.f32 %v3612_v38, %v3753_v8 }
 0x1f4   : > { %v2952_v13 = vpop.f32.mrf.mxu1 }
 0x1f5   : > { %1521 = vadd.xlane.f32.xlu1 %v1430_v12  ;;  %v1431_v14 = vmul.f32 %v3612_v38, %v3756_v11  ;;  %v3763_v22 = vadd.f32 %v2952_v13, %v3610_v36 }
 0x1f6   : > { %v1229_v19 = vpop.f32.mrf.mxu1 }
 0x1f7   : > { %v3766_v23 = vadd.f32 %v1229_v19, %v3610_v36  ;;  %1523 = vadd.xlane.f32.xlu0 %v1431_v14  ;;  %v1434_v34 = vmul.f32 %v3612_v38, %v3763_v22 }
 0x1f8   : > { %v2955_v27 = vpop.f32.mrf.mxu1 }
 0x1f9   : > { %1525 = vadd.xlane.f32.xlu1 %v1432_v24  ;;  %v1433_v28 = vmul.f32 %v3612_v38, %v3766_v23  ;;  %v3773_v30 = vadd.f32 %v2955_v27, %v3610_v36 }
 0x1fa   : > { %v1239_v29 = vpop.f32.mrf.mxu1 }
 0x1fb   : > { %v3776_v33 = vadd.f32 %v1239_v29, %v3610_v36  ;;  %1527 = vadd.xlane.f32.xlu0 %v1433_v28  ;;  %v1436_v45 = vmul.f32 %v3612_v38, %v3773_v30 }
 0x1fc   : > { %v2958_v35 = vpop.f32.mrf.mxu1 }
 0x1fd   : > { %1529 = vadd.xlane.f32.xlu1 %v1434_v34  ;;  %v1435_v37 = vmul.f32 %v3612_v38, %v3776_v33  ;;  %v3783_v42 = vadd.f32 %v2958_v35, %v3610_v36 }
 0x1fe   : > { %v1249_v17 = vpop.f32.mrf.mxu1 }
 0x1ff   : > { %v3786_v20 = vadd.f32 %v1249_v17, %v3610_v36  ;;  %1531 = vadd.xlane.f32.xlu0 %v1435_v37  ;;  %v1438_v59 = vmul.f32 %v3612_v38, %v3783_v42 }
 0x200   : > { %v2961_v48 = vpop.f32.mrf.mxu1 }
 0x201   : > { %1533 = vadd.xlane.f32.xlu1 %v1436_v45  ;;  %v1437_v51 = vmul.f32 %v3612_v38, %v3786_v20  ;;  %v3793_v53 = vadd.f32 %v2961_v48, %v3610_v36 }
 0x202   : > { %v1259_v52 = vpop.f32.mrf.mxu1 }
 0x203   : > { %v3796_v58 = vadd.f32 %v1259_v52, %v3610_v36  ;;  %1535 = vadd.xlane.f32.xlu0 %v1437_v51  ;;  %v1440_v7 = vmul.f32 %v3612_v38, %v3793_v53 }
 0x204   : > { %v2964_v60 = vpop.f32.mrf.mxu1 }
 0x205   : > { %1537 = vadd.xlane.f32.xlu1 %v1438_v59  ;;  %v1439_v63 = vmul.f32 %v3612_v38, %v3796_v58  ;;  %v3803_v5 = vadd.f32 %v2964_v60, %v3610_v36 }
 0x206   : > { %v1269_v2 = vpop.f32.mrf.mxu1 }
 0x207   : > { %v3806_v6 = vadd.f32 %v1269_v2, %v3610_v36  ;;  %1539 = vadd.xlane.f32.xlu0 %v1439_v63  ;;  %v1442_v27 = vmul.f32 %v3612_v38, %v3803_v5 }
 0x208   : > { %v2967_v12 = vpop.f32.mrf.mxu1 }
 0x209   : > { %1541 = vadd.xlane.f32.xlu1 %v1440_v7  ;;  %v1441_v13 = vmul.f32 %v3612_v38, %v3806_v6  ;;  %v3813_v19 = vadd.f32 %v2967_v12, %v3610_v36 }
 0x20a   : > { %v1279_v14 = vpop.f32.mrf.mxu1 }
 0x20b   : > { %v3816_v24 = vadd.f32 %v1279_v14, %v3610_v36  ;;  %1543 = vadd.xlane.f32.xlu0 %v1441_v13  ;;  %v1444_v17 = vmul.f32 %v3612_v38, %v3813_v19 }
 0x20c   : > { %v2970_v28 = vpop.f32.mrf.mxu1 }
 0x20d   : > { %1545 = vadd.xlane.f32.xlu1 %v1442_v27  ;;  %v1443_v29 = vmul.f32 %v3612_v38, %v3816_v24  ;;  %v3823_v35 = vadd.f32 %v2970_v28, %v3610_v36 }
 0x20e   : > { %v1289_v34 = vpop.f32.mrf.mxu1 }
 0x20f   : > { %v3826_v37 = vadd.f32 %v1289_v34, %v3610_v36  ;;  %1547 = vadd.xlane.f32.xlu0 %v1443_v29  ;;  %v1446_v60 = vmul.f32 %v3612_v38, %v3823_v35 }
 0x210   : > { %v2973_v45 = vpop.f32.mrf.mxu1 }
 0x211   : > { %1549 = vadd.xlane.f32.xlu1 %v1444_v17  ;;  %v1445_v48 = vmul.f32 %v3612_v38, %v3826_v37  ;;  %v3833_v52 = vadd.f32 %v2973_v45, %v3610_v36 }
 0x212   : > { %v1299_v51 = vpop.f32.mrf.mxu1 }
 0x213   : > { %v3836_v59 = vadd.f32 %v1299_v51, %v3610_v36  ;;  %1551 = vadd.xlane.f32.xlu0 %v1445_v48  ;;  %v1448_v14 = vmul.f32 %v3612_v38, %v3833_v52 }
 0x214   : > { %v2976_v63 = vpop.f32.mrf.mxu1 }
 0x215   : > { %1553 = vadd.xlane.f32.xlu1 %v1446_v60  ;;  %v1447_v2 = vmul.f32 %v3612_v38, %v3836_v59  ;;  %v3843_v12 = vadd.f32 %v2976_v63, %v3610_v36 }
 0x216   : > { %v1309_v7 = vpop.f32.mrf.mxu1 }
 0x217   : > { %v3846_v13 = vadd.f32 %v1309_v7, %v3610_v36  ;;  %1555 = vadd.xlane.f32.xlu0 %v1447_v2  ;;  %v1450_v45 = vmul.f32 %v3612_v38, %v3843_v12 }
 0x218   : > { %v2979_v27 = vpop.f32.mrf.mxu1 }
 0x219   : > { %1557 = vadd.xlane.f32.xlu1 %v1448_v14  ;;  %v1449_v28 = vmul.f32 %v3612_v38, %v3846_v13  ;;  %v3853_v34 = vadd.f32 %v2979_v27, %v3610_v36 }
 0x21a   : > { %v1319_v29 = vpop.f32.mrf.mxu1 }
 0x21b   : > { %4682 = vst [vmem:[#allocation9_spill] sm:$0xff] %v3853_v34  ;;  %v3856_v17 = vadd.f32 %v1319_v29, %v3610_v36  ;;  %1559 = vadd.xlane.f32.xlu0 %v1449_v28  ;;  %v1452_v7 = vmul.f32 %v3612_v38, %v3853_v34 }
 0x21c   : > { %v2982_v48 = vpop.f32.mrf.mxu1 }
 0x21d   : > { %1561 = vadd.xlane.f32.xlu1 %v1450_v45  ;;  %v1451_v51 = vmul.f32 %v3612_v38, %v3856_v17  ;;  %v3863_v63 = vadd.f32 %v2982_v48, %v3610_v36 }
 0x21e   : > { %v1329_v60 = vpop.f32.mrf.mxu1 }
 0x21f   : > { %4683 = vst [vmem:[#allocation10_spill] sm:$0xff] %v3863_v63  ;;  %v3866_v2 = vadd.f32 %v1329_v60, %v3610_v36  ;;  %1563 = vadd.xlane.f32.xlu0 %v1451_v51  ;;  %v1454_v48 = vmul.f32 %v3612_v38, %v3863_v63 }
 0x220   : > { %v2985_v14 = vpop.f32.mrf.mxu1 }
 0x221   : > { %4684 = vst [vmem:[#allocation11_spill] sm:$0xff] %v3866_v2  ;;  %1565 = vadd.xlane.f32.xlu1 %v1452_v7  ;;  %v1453_v27 = vmul.f32 %v3612_v38, %v3866_v2  ;;  %v3873_v29 = vadd.f32 %v2985_v14, %v3610_v36 }
 0x222   : > { %v1339_v28 = vpop.f32.mrf.mxu1 }
 0x223   : > { %4685 = vst [vmem:[#allocation12_spill] sm:$0xff] %v3873_v29  ;;  %v3876_v45 = vadd.f32 %v1339_v28, %v3610_v36  ;;  %1567 = vadd.xlane.f32.xlu0 %v1453_v27  ;;  %v1456_v14 = vmul.f32 %v3612_v38, %v3873_v29 }
 0x224   : > { %v2988_v51 = vpop.f32.mrf.mxu1 }
 0x225   : > { %4686 = vst [vmem:[#allocation13_spill] sm:$0xff] %v3876_v45  ;;  %1569 = vadd.xlane.f32.xlu1 %v1454_v48  ;;  %v1455_v60 = vmul.f32 %v3612_v38, %v3876_v45  ;;  %v3883_v18 = vadd.f32 %v2988_v51, %v3610_v36 }
 0x226   : > { %v1349_v7 = vpop.f32.mrf.mxu1 }
 0x227   : > { %4687 = vst [vmem:[#allocation14_spill] sm:$0xff] %v3883_v18  ;;  %v3886_v2 = vadd.f32 %v1349_v7, %v3610_v36  ;;  %1571 = vadd.xlane.f32.xlu0 %v1455_v60  ;;  %v1458_v51 = vmul.f32 %v3612_v38, %v3883_v18 }
 0x228   : > { %v2991_v27 = vpop.f32.mrf.mxu1 }
 0x229   : > { %4688 = vst [vmem:[#allocation15_spill] sm:$0xff] %v3886_v2  ;;  %1573 = vadd.xlane.f32.xlu1 %v1456_v14  ;;  %v1457_v28 = vmul.f32 %v3612_v38, %v3886_v2  ;;  %v3893_v63 = vadd.f32 %v2991_v27, %v3610_v36 }
 0x22a   : > { %v1359_v48 = vpop.f32.mrf.mxu1 }
 0x22b   : > { %4689 = vst [vmem:[#allocation16_spill] sm:$0xff] %v3893_v63  ;;  %v3896_v45 = vadd.f32 %v1359_v48, %v3610_v36  ;;  %1575 = vadd.xlane.f32.xlu0 %v1457_v28  ;;  %v1460_v27 = vmul.f32 %v3612_v38, %v3893_v63 }
 0x22c   : > { %v2994_v60 = vpop.f32.mrf.mxu1 }
 0x22d   : > { %4690 = vst [vmem:[#allocation17_spill] sm:$0xff] %v3896_v45  ;;  %1577 = vadd.xlane.f32.xlu1 %v1458_v51  ;;  %v1459_v7 = vmul.f32 %v3612_v38, %v3896_v45  ;;  %v3903_v29 = vadd.f32 %v2994_v60, %v3610_v36 }
 0x22e   : > { %v1369_v14 = vpop.f32.mrf.mxu1 }
 0x22f   : > { %4691 = vst [vmem:[#allocation18_spill] sm:$0xff] %v3903_v29  ;;  %v3906_v2 = vadd.f32 %v1369_v14, %v3610_v36  ;;  %1579 = vadd.xlane.f32.xlu0 %v1459_v7  ;;  %v1462_v60 = vmul.f32 %v3612_v38, %v3903_v29 }
 0x230   : > { %v2997_v28 = vpop.f32.mrf.mxu1 }
 0x231   : > { %4692 = vst [vmem:[#allocation19_spill] sm:$0xff] %v3906_v2  ;;  %1581 = vadd.xlane.f32.xlu1 %v1460_v27  ;;  %v1461_v48 = vmul.f32 %v3612_v38, %v3906_v2  ;;  %v3913_v18 = vadd.f32 %v2997_v28, %v3610_v36 }
 0x232   : > { %v1379_v51 = vpop.f32.mrf.mxu1 }
 0x233   : > { %v3916_v45 = vadd.f32 %v1379_v51, %v3610_v36  ;;  %1583 = vadd.xlane.f32.xlu0 %v1461_v48  ;;  %v1464_v28 = vmul.f32 %v3612_v38, %v3913_v18 }
 0x234   : > { %v3000_v7 = vpop.f32.mrf.mxu1 }
 0x235   : > { %4693 = vst [vmem:[#allocation20_spill] sm:$0xff] %v3916_v45  ;;  %1585 = vadd.xlane.f32.xlu1 %v1462_v60  ;;  %v1463_v14 = vmul.f32 %v3612_v38, %v3916_v45  ;;  %v3923_v63 = vadd.f32 %v3000_v7, %v3610_v36 }
 0x236   : > { %v1389_v27 = vpop.f32.mrf.mxu1 }
 0x237   : > { %4694 = vst [vmem:[#allocation21_spill] sm:$0xff] %v3923_v63  ;;  %v3926_v2 = vadd.f32 %v1389_v27, %v3610_v36  ;;  %1587 = vadd.xlane.f32.xlu0 %v1463_v14  ;;  %v1466_v51 = vmul.f32 %v3612_v38, %v3923_v63 }
 0x239   : > { %4695 = vst [vmem:[#allocation22_spill] sm:$0xff] %v3926_v2  ;;  %1589 = vadd.xlane.f32.xlu1 %v1464_v28  ;;  %v1465_v48 = vmul.f32 %v3612_v38, %v3926_v2 }
 0x23b   : > { %1591 = vadd.xlane.f32.xlu0 %v1465_v48 }
 0x23d   : > { %1593 = vadd.xlane.f32.xlu1 %v1466_v51 }
 0x246   : > { %v1470_v60 = vpop.xlane.xlu0 %1469 }
 0x247   : > { %v1596_v45 = vmul.f32 0.03125, %v1470_v60 }
 0x249   : > { %v1660_v7 = vsub.f32 %v3615_v21, %v1596_v45 }
 0x24a   : > { %v1474_v29 = vpop.xlane.xlu1 %1473  ;;  %v1468_v36 = vpop.xlane.xlu0 %1467 }
 0x24b   : > { %v1598_v27 = vmul.f32 0.03125, %v1474_v29  ;;  %v1595_v14 = vmul.f32 0.03125, %v1468_v36  ;;  %v3936_v34 = vmul.f32 %v3612_v38, %v1660_v7 }
 0x24d   : > { %v1662_v28 = vsub.f32 %v3623_v43, %v1598_v27  ;;  %v1659_v2 = vsub.f32 %v3618_v41, %v1595_v14  ;;  %v1788_v48 = vmul.f32 %v3936_v34, %v3936_v34 }
 0x24e   : > { %v1472_v63 = vpop.xlane.xlu1 %1471 }
 0x24f   : > { %v1597_v51 = vmul.f32 0.03125, %v1472_v63  ;;  %1853 = vadd.xlane.f32.xlu1 %v1788_v48  ;;  %v3943_v60 = vmul.f32 %v3612_v38, %v1662_v28  ;;  %v3946_v21 = vmul.f32 %v3612_v38, %v1659_v2 }
 0x250   : > { %v1476_v29 = vpop.xlane.xlu0 %1475 }
 0x251   : > { %4696 = vst [vmem:[#allocation23_spill] sm:$0xff] %v3946_v21  ;;  %v1661_v45 = vsub.f32 %v3626_v44, %v1597_v51  ;;  %v1599_v7 = vmul.f32 0.03125, %v1476_v29  ;;  %v1790_v43 = vmul.f32 %v3943_v60, %v3943_v60  ;;  %v1787_v41 = vmul.f32 %v3946_v21, %v3946_v21 }
 0x252   : > { %v1478_v36 = vpop.xlane.xlu1 %1477 }
 0x253   : > { %v1663_v63 = vsub.f32 %v3636_v50, %v1599_v7  ;;  %v1600_v27 = vmul.f32 0.03125, %v1478_v36  ;;  %1857 = vadd.xlane.f32.xlu1 %v1790_v43  ;;  %1851 = vadd.xlane.f32.xlu0 %v1787_v41  ;;  %v3955_v14 = vmul.f32 %v3612_v38, %v1661_v45 }
 0x254   : > { %v1480_v2 = vpop.xlane.xlu0 %1479 }
 0x255   : > { %v1664_v28 = vsub.f32 %v3633_v49, %v1600_v27  ;;  %v1601_v44 = vmul.f32 0.03125, %v1480_v2  ;;  %v1789_v48 = vmul.f32 %v3955_v14, %v3955_v14  ;;  %v3961_v51 = vmul.f32 %v3612_v38, %v1663_v63 }
 0x256   : > { %v1482_v29 = vpop.xlane.xlu1 %1481 }
 0x257   : > { %v1665_v21 = vsub.f32 %v3646_v56, %v1601_v44  ;;  %v1602_v50 = vmul.f32 0.03125, %v1482_v29  ;;  %1855 = vadd.xlane.f32.xlu0 %v1789_v48  ;;  %v3965_v7 = vmul.f32 %v3612_v38, %v1664_v28  ;;  %v1791_v43 = vmul.f32 %v3961_v51, %v3961_v51 }
 0x258   : > { %v1484_v45 = vpop.xlane.xlu0 %1483 }
 0x259   : > { %v1666_v49 = vsub.f32 %v3643_v55, %v1602_v50  ;;  %v1603_v41 = vmul.f32 0.03125, %v1484_v45  ;;  %v1792_v36 = vmul.f32 %v3965_v7, %v3965_v7  ;;  %v3973_v63 = vmul.f32 %v3612_v38, %v1665_v21 }
 0x25a   : > { %v1486_v27 = vpop.xlane.xlu1 %1485 }
 0x25b   : > { %v1667_v56 = vsub.f32 %v3656_v62, %v1603_v41  ;;  %v1604_v2 = vmul.f32 0.03125, %v1486_v27  ;;  %1861 = vadd.xlane.f32.xlu1 %v1792_v36  ;;  %1859 = vadd.xlane.f32.xlu0 %v1791_v43  ;;  %v3977_v28 = vmul.f32 %v3612_v38, %v1666_v49  ;;  %v1793_v55 = vmul.f32 %v3973_v63, %v3973_v63 }
 0x25c   : > { %v1488_v44 = vpop.xlane.xlu0 %1487 }
 0x25d   : > { %v1668_v48 = vsub.f32 %v3653_v61, %v1604_v2  ;;  %v1605_v29 = vmul.f32 0.03125, %v1488_v44  ;;  %v1794_v21 = vmul.f32 %v3977_v28, %v3977_v28  ;;  %v3985_v50 = vmul.f32 %v3612_v38, %v1667_v56 }
 0x25e   : > { %v1490_v62 = vpop.xlane.xlu1 %1489 }
 0x25f   : > { %v1669_v45 = vsub.f32 %v3666_v4, %v1605_v29  ;;  %v1606_v43 = vmul.f32 0.03125, %v1490_v62  ;;  %1865 = vadd.xlane.f32.xlu1 %v1794_v21  ;;  %1863 = vadd.xlane.f32.xlu0 %v1793_v55  ;;  %v3989_v49 = vmul.f32 %v3612_v38, %v1668_v48  ;;  %v1795_v61 = vmul.f32 %v3985_v50, %v3985_v50 }
 0x260   : > { %v1492_v41 = vpop.xlane.xlu0 %1491 }
 0x261   : > { %v1670_v36 = vsub.f32 %v3663_v3, %v1606_v43  ;;  %v1607_v27 = vmul.f32 0.03125, %v1492_v41  ;;  %v1796_v56 = vmul.f32 %v3989_v49, %v3989_v49  ;;  %v3997_v2 = vmul.f32 %v3612_v38, %v1669_v45 }
 0x262   : > { %v1494_v4 = vpop.xlane.xlu1 %1493 }
 0x263   : > { %v1671_v44 = vsub.f32 %v3676_v10, %v1607_v27  ;;  %v1608_v55 = vmul.f32 0.03125, %v1494_v4  ;;  %1869 = vadd.xlane.f32.xlu1 %v1796_v56  ;;  %1867 = vadd.xlane.f32.xlu0 %v1795_v61  ;;  %v4001_v48 = vmul.f32 %v3612_v38, %v1670_v36  ;;  %v1797_v3 = vmul.f32 %v3997_v2, %v3997_v2 }
 0x264   : > { %v1496_v29 = vpop.xlane.xlu0 %1495 }
 0x265   : > { %v1672_v21 = vsub.f32 %v3673_v9, %v1608_v55  ;;  %v1609_v62 = vmul.f32 0.03125, %v1496_v29  ;;  %v1798_v45 = vmul.f32 %v4001_v48, %v4001_v48  ;;  %v4009_v43 = vmul.f32 %v3612_v38, %v1671_v44 }
 0x266   : > { %v1498_v10 = vpop.xlane.xlu1 %1497 }
 0x267   : > { %v1673_v41 = vsub.f32 %v3686_v16, %v1609_v62  ;;  %v1610_v61 = vmul.f32 0.03125, %v1498_v10  ;;  %1873 = vadd.xlane.f32.xlu1 %v1798_v45  ;;  %1871 = vadd.xlane.f32.xlu0 %v1797_v3  ;;  %v4013_v36 = vmul.f32 %v3612_v38, %v1672_v21  ;;  %v1799_v9 = vmul.f32 %v4009_v43, %v4009_v43 }
 0x268   : > { %v1500_v27 = vpop.xlane.xlu0 %1499 }
 0x269   : > { %v1674_v56 = vsub.f32 %v3683_v15, %v1610_v61  ;;  %v1611_v4 = vmul.f32 0.03125, %v1500_v27  ;;  %v1800_v44 = vmul.f32 %v4013_v36, %v4013_v36  ;;  %v4021_v55 = vmul.f32 %v3612_v38, %v1673_v41 }
 0x26a   : > { %v1502_v16 = vpop.xlane.xlu1 %1501 }
 0x26b   : > { %v1675_v29 = vsub.f32 %v3696_v26, %v1611_v4  ;;  %v1612_v3 = vmul.f32 0.03125, %v1502_v16  ;;  %1877 = vadd.xlane.f32.xlu1 %v1800_v44  ;;  %1875 = vadd.xlane.f32.xlu0 %v1799_v9  ;;  %v4025_v21 = vmul.f32 %v3612_v38, %v1674_v56  ;;  %v1801_v15 = vmul.f32 %v4021_v55, %v4021_v55 }
 0x26c   : > { %v1504_v62 = vpop.xlane.xlu0 %1503 }
 0x26d   : > { %v1676_v45 = vsub.f32 %v3693_v25, %v1612_v3  ;;  %v1613_v10 = vmul.f32 0.03125, %v1504_v62  ;;  %v1802_v41 = vmul.f32 %v4025_v21, %v4025_v21  ;;  %v4033_v61 = vmul.f32 %v3612_v38, %v1675_v29 }
 0x26e   : > { %v1506_v26 = vpop.xlane.xlu1 %1505 }
 0x26f   : > { %v1677_v27 = vsub.f32 %v3706_v32, %v1613_v10  ;;  %v1614_v9 = vmul.f32 0.03125, %v1506_v26  ;;  %1881 = vadd.xlane.f32.xlu1 %v1802_v41  ;;  %1879 = vadd.xlane.f32.xlu0 %v1801_v15  ;;  %v4037_v56 = vmul.f32 %v3612_v38, %v1676_v45  ;;  %v1803_v25 = vmul.f32 %v4033_v61, %v4033_v61 }
 0x270   : > { %v1508_v4 = vpop.xlane.xlu0 %1507 }
 0x271   : > { %v1678_v44 = vsub.f32 %v3703_v31, %v1614_v9  ;;  %v1615_v16 = vmul.f32 0.03125, %v1508_v4  ;;  %v1804_v29 = vmul.f32 %v4037_v56, %v4037_v56  ;;  %v4045_v3 = vmul.f32 %v3612_v38, %v1677_v27 }
 0x272   : > { %v1510_v32 = vpop.xlane.xlu1 %1509 }
 0x273   : > { %v1679_v62 = vsub.f32 %v3716_v40, %v1615_v16  ;;  %v1616_v15 = vmul.f32 0.03125, %v1510_v32  ;;  %1885 = vadd.xlane.f32.xlu1 %v1804_v29  ;;  %1883 = vadd.xlane.f32.xlu0 %v1803_v25  ;;  %v4049_v45 = vmul.f32 %v3612_v38, %v1678_v44  ;;  %v1805_v31 = vmul.f32 %v4045_v3, %v4045_v3 }
 0x274   : > { %v1512_v10 = vpop.xlane.xlu0 %1511 }
 0x275   : > { %v1680_v41 = vsub.f32 %v3713_v39, %v1616_v15  ;;  %v1617_v26 = vmul.f32 0.03125, %v1512_v10  ;;  %v1806_v27 = vmul.f32 %v4049_v45, %v4049_v45  ;;  %v4057_v9 = vmul.f32 %v3612_v38, %v1679_v62 }
 0x276   : > { %v1514_v40 = vpop.xlane.xlu1 %1513 }
 0x277   : > { %v1681_v4 = vsub.f32 %v3726_v47, %v1617_v26  ;;  %v1618_v25 = vmul.f32 0.03125, %v1514_v40  ;;  %1889 = vadd.xlane.f32.xlu1 %v1806_v27  ;;  %1887 = vadd.xlane.f32.xlu0 %v1805_v31  ;;  %v4061_v44 = vmul.f32 %v3612_v38, %v1680_v41  ;;  %v1807_v39 = vmul.f32 %v4057_v9, %v4057_v9 }
 0x278   : > { %v1516_v16 = vpop.xlane.xlu0 %1515 }
 0x279   : > { %v1682_v29 = vsub.f32 %v3723_v46, %v1618_v25  ;;  %v1619_v32 = vmul.f32 0.03125, %v1516_v16  ;;  %v1808_v62 = vmul.f32 %v4061_v44, %v4061_v44  ;;  %v4069_v15 = vmul.f32 %v3612_v38, %v1681_v4 }
 0x27a   : > { %v1518_v47 = vpop.xlane.xlu1 %1517 }
 0x27b   : > { %v1683_v10 = vsub.f32 %v3736_v57, %v1619_v32  ;;  %v1620_v31 = vmul.f32 0.03125, %v1518_v47  ;;  %1893 = vadd.xlane.f32.xlu1 %v1808_v62  ;;  %1891 = vadd.xlane.f32.xlu0 %v1807_v39  ;;  %v4073_v41 = vmul.f32 %v3612_v38, %v1682_v29  ;;  %v1809_v46 = vmul.f32 %v4069_v15, %v4069_v15 }
 0x27c   : > { %v1520_v26 = vpop.xlane.xlu0 %1519 }
 0x27d   : > { %v1684_v27 = vsub.f32 %v3733_v54, %v1620_v31  ;;  %v1621_v40 = vmul.f32 0.03125, %v1520_v26  ;;  %v1810_v4 = vmul.f32 %v4073_v41, %v4073_v41  ;;  %v4081_v25 = vmul.f32 %v3612_v38, %v1683_v10 }
 0x27e   : > { %v1522_v57 = vpop.xlane.xlu1 %1521 }
 0x27f   : > { %v1685_v16 = vsub.f32 %v3746_v1, %v1621_v40  ;;  %v1622_v39 = vmul.f32 0.03125, %v1522_v57  ;;  %1897 = vadd.xlane.f32.xlu1 %v1810_v4  ;;  %1895 = vadd.xlane.f32.xlu0 %v1809_v46  ;;  %v4085_v29 = vmul.f32 %v3612_v38, %v1684_v27  ;;  %v1811_v54 = vmul.f32 %v4081_v25, %v4081_v25 }
 0x280   : > { %v1524_v32 = vpop.xlane.xlu0 %1523 }
 0x281   : > { %v1686_v62 = vsub.f32 %v3743_v0, %v1622_v39  ;;  %v1623_v47 = vmul.f32 0.03125, %v1524_v32  ;;  %v1812_v10 = vmul.f32 %v4085_v29, %v4085_v29  ;;  %v4093_v31 = vmul.f32 %v3612_v38, %v1685_v16 }
 0x282   : > { %v1526_v1 = vpop.xlane.xlu1 %1525 }
 0x283   : > { %v1687_v26 = vsub.f32 %v3756_v11, %v1623_v47  ;;  %v1624_v46 = vmul.f32 0.03125, %v1526_v1  ;;  %1901 = vadd.xlane.f32.xlu1 %v1812_v10  ;;  %1899 = vadd.xlane.f32.xlu0 %v1811_v54  ;;  %v4097_v27 = vmul.f32 %v3612_v38, %v1686_v62  ;;  %v1813_v0 = vmul.f32 %v4093_v31, %v4093_v31 }
 0x284   : > { %v1528_v40 = vpop.xlane.xlu0 %1527 }
 0x285   : > { %v1688_v4 = vsub.f32 %v3753_v8, %v1624_v46  ;;  %v1625_v57 = vmul.f32 0.03125, %v1528_v40  ;;  %v1814_v16 = vmul.f32 %v4097_v27, %v4097_v27  ;;  %v4105_v39 = vmul.f32 %v3612_v38, %v1687_v26 }
 0x286   : > { %v1530_v11 = vpop.xlane.xlu1 %1529 }
 0x287   : > { %v1689_v32 = vsub.f32 %v3766_v23, %v1625_v57  ;;  %v1626_v54 = vmul.f32 0.03125, %v1530_v11  ;;  %1905 = vadd.xlane.f32.xlu1 %v1814_v16  ;;  %1903 = vadd.xlane.f32.xlu0 %v1813_v0  ;;  %v4109_v62 = vmul.f32 %v3612_v38, %v1688_v4  ;;  %v1815_v8 = vmul.f32 %v4105_v39, %v4105_v39 }
 0x288   : > { %v1532_v47 = vpop.xlane.xlu0 %1531 }
 0x289   : > { %v1690_v10 = vsub.f32 %v3763_v22, %v1626_v54  ;;  %v1627_v1 = vmul.f32 0.03125, %v1532_v47  ;;  %v1816_v26 = vmul.f32 %v4109_v62, %v4109_v62  ;;  %v4117_v46 = vmul.f32 %v3612_v38, %v1689_v32 }
 0x28a   : > { %v1534_v23 = vpop.xlane.xlu1 %1533 }
 0x28b   : > { %v1691_v40 = vsub.f32 %v3776_v33, %v1627_v1  ;;  %v1628_v0 = vmul.f32 0.03125, %v1534_v23  ;;  %1909 = vadd.xlane.f32.xlu1 %v1816_v26  ;;  %1907 = vadd.xlane.f32.xlu0 %v1815_v8  ;;  %v4121_v4 = vmul.f32 %v3612_v38, %v1690_v10  ;;  %v1817_v22 = vmul.f32 %v4117_v46, %v4117_v46 }
 0x28c   : > { %v1536_v57 = vpop.xlane.xlu0 %1535 }
 0x28d   : > { %v1692_v16 = vsub.f32 %v3773_v30, %v1628_v0  ;;  %v1629_v11 = vmul.f32 0.03125, %v1536_v57  ;;  %v1818_v32 = vmul.f32 %v4121_v4, %v4121_v4  ;;  %v4129_v54 = vmul.f32 %v3612_v38, %v1691_v40 }
 0x28e   : > { %v1538_v33 = vpop.xlane.xlu1 %1537 }
 0x28f   : > { %v1693_v47 = vsub.f32 %v3786_v20, %v1629_v11  ;;  %v1630_v8 = vmul.f32 0.03125, %v1538_v33  ;;  %1913 = vadd.xlane.f32.xlu1 %v1818_v32  ;;  %1911 = vadd.xlane.f32.xlu0 %v1817_v22  ;;  %v4133_v10 = vmul.f32 %v3612_v38, %v1692_v16  ;;  %v1819_v30 = vmul.f32 %v4129_v54, %v4129_v54 }
 0x290   : > { %v1540_v1 = vpop.xlane.xlu0 %1539 }
 0x291   : > { %v4138_v26 = vmul.f32 %v3612_v38, %v1693_v47  ;;  %v1694_v23 = vsub.f32 %v3783_v42, %v1630_v8  ;;  %v1631_v40 = vmul.f32 0.03125, %v1540_v1  ;;  %v1820_v0 = vmul.f32 %v4133_v10, %v4133_v10 }
 0x292   : > { %v1542_v20 = vpop.xlane.xlu1 %1541 }
 0x293   : > { %v4144_v57 = vmul.f32 %v3612_v38, %v1694_v23  ;;  %v1695_v22 = vsub.f32 %v3796_v58, %v1631_v40  ;;  %v1632_v16 = vmul.f32 0.03125, %v1542_v20  ;;  %1917 = vadd.xlane.f32.xlu1 %v1820_v0  ;;  %1915 = vadd.xlane.f32.xlu0 %v1819_v30  ;;  %v1821_v32 = vmul.f32 %v4138_v26, %v4138_v26 }
 0x294   : > { %v1544_v11 = vpop.xlane.xlu0 %1543 }
 0x295   : > { %v4150_v33 = vmul.f32 %v3612_v38, %v1695_v22  ;;  %v1696_v42 = vsub.f32 %v3793_v53, %v1632_v16  ;;  %v1633_v47 = vmul.f32 0.03125, %v1544_v11  ;;  %v1822_v8 = vmul.f32 %v4144_v57, %v4144_v57 }
 0x296   : > { %v1546_v1 = vpop.xlane.xlu1 %1545 }
 0x297   : > { %v4156_v23 = vmul.f32 %v3612_v38, %v1696_v42  ;;  %v1697_v58 = vsub.f32 %v3806_v6, %v1633_v47  ;;  %v1634_v30 = vmul.f32 0.03125, %v1546_v1  ;;  %1921 = vadd.xlane.f32.xlu1 %v1822_v8  ;;  %1919 = vadd.xlane.f32.xlu0 %v1821_v32  ;;  %v1823_v0 = vmul.f32 %v4150_v33, %v4150_v33 }
 0x298   : > { %v1548_v40 = vpop.xlane.xlu0 %1547 }
 0x299   : > { %v4162_v20 = vmul.f32 %v3612_v38, %v1697_v58  ;;  %v1698_v53 = vsub.f32 %v3803_v5, %v1634_v30  ;;  %v1635_v22 = vmul.f32 0.03125, %v1548_v40  ;;  %v1824_v16 = vmul.f32 %v4156_v23, %v4156_v23 }
 0x29a   : > { %v1550_v11 = vpop.xlane.xlu1 %1549 }
 0x29b   : > { %v4168_v42 = vmul.f32 %v3612_v38, %v1698_v53  ;;  %v1699_v6 = vsub.f32 %v3816_v24, %v1635_v22  ;;  %v1636_v32 = vmul.f32 0.03125, %v1550_v11  ;;  %1925 = vadd.xlane.f32.xlu1 %v1824_v16  ;;  %1923 = vadd.xlane.f32.xlu0 %v1823_v0  ;;  %v1825_v8 = vmul.f32 %v4162_v20, %v4162_v20 }
 0x29c   : > { %v1552_v47 = vpop.xlane.xlu0 %1551 }
 0x29d   : > { %v4174_v1 = vmul.f32 %v3612_v38, %v1699_v6  ;;  %v1700_v5 = vsub.f32 %v3813_v19, %v1636_v32  ;;  %v1637_v58 = vmul.f32 0.03125, %v1552_v47  ;;  %v1826_v30 = vmul.f32 %v4168_v42, %v4168_v42 }
 0x29e   : > { %v1554_v40 = vpop.xlane.xlu1 %1553 }
 0x29f   : > { %v4180_v53 = vmul.f32 %v3612_v38, %v1700_v5  ;;  %v1701_v24 = vsub.f32 %v3826_v37, %v1637_v58  ;;  %v1638_v0 = vmul.f32 0.03125, %v1554_v40  ;;  %1929 = vadd.xlane.f32.xlu1 %v1826_v30  ;;  %1927 = vadd.xlane.f32.xlu0 %v1825_v8  ;;  %v1827_v16 = vmul.f32 %v4174_v1, %v4174_v1 }
 0x2a0   : > { %v1556_v22 = vpop.xlane.xlu0 %1555 }
 0x2a1   : > { %v4186_v11 = vmul.f32 %v3612_v38, %v1701_v24  ;;  %v1702_v19 = vsub.f32 %v3823_v35, %v1638_v0  ;;  %v1639_v6 = vmul.f32 0.03125, %v1556_v22  ;;  %v1828_v32 = vmul.f32 %v4180_v53, %v4180_v53 }
 0x2a2   : > { %v1558_v47 = vpop.xlane.xlu1 %1557 }
 0x2a3   : > { %v4192_v5 = vmul.f32 %v3612_v38, %v1702_v19  ;;  %v1703_v37 = vsub.f32 %v3836_v59, %v1639_v6  ;;  %v1640_v8 = vmul.f32 0.03125, %v1558_v47  ;;  %1933 = vadd.xlane.f32.xlu1 %v1828_v32  ;;  %1931 = vadd.xlane.f32.xlu0 %v1827_v16  ;;  %v1829_v30 = vmul.f32 %v4186_v11, %v4186_v11 }
 0x2a4   : > { %v1560_v58 = vpop.xlane.xlu0 %1559 }
 0x2a5   : > { %v4198_v40 = vmul.f32 %v3612_v38, %v1703_v37  ;;  %v1704_v35 = vsub.f32 %v3833_v52, %v1640_v8  ;;  %v1641_v24 = vmul.f32 0.03125, %v1560_v58  ;;  %v1830_v0 = vmul.f32 %v4192_v5, %v4192_v5 }
 0x2a6   : > { %v1562_v22 = vpop.xlane.xlu1 %1561 }
 0x2a7   : > { %4697 = vst [vmem:[#allocation24_spill] sm:$0xff] %v4198_v40  ;;  %v4204_v19 = vmul.f32 %v3612_v38, %v1704_v35  ;;  %v1705_v59 = vsub.f32 %v3846_v13, %v1641_v24  ;;  %v1642_v16 = vmul.f32 0.03125, %v1562_v22  ;;  %1937 = vadd.xlane.f32.xlu1 %v1830_v0  ;;  %1935 = vadd.xlane.f32.xlu0 %v1829_v30 }
 0x2a8   : > { %v1564_v6 = vpop.xlane.xlu0 %1563  ;;  %v1831_v32 = vmul.f32 %v4198_v40, %v4198_v40 }
 0x2a9   : > { %v4210_v47 = vmul.f32 %v3612_v38, %v1705_v59  ;;  %v1706_v52 = vsub.f32 %v3843_v12, %v1642_v16  ;;  %v1643_v37 = vmul.f32 0.03125, %v1564_v6  ;;  %v1832_v8 = vmul.f32 %v4204_v19, %v4204_v19  ;;  %v4701_v12 = vld [vmem:[#allocation9_spill] sm:$0xff] }
 0x2aa   : > { %v1566_v58 = vpop.xlane.xlu1 %1565 }
 0x2ab   : > { %4698 = vst [vmem:[#allocation25_spill] sm:$0xff] %v4210_v47  ;;  %v4216_v35 = vmul.f32 %v3612_v38, %v1706_v52  ;;  %v1707_v13 = vsub.f32 %v3856_v17, %v1643_v37  ;;  %v1644_v30 = vmul.f32 0.03125, %v1566_v58  ;;  %1941 = vadd.xlane.f32.xlu1 %v1832_v8  ;;  %1939 = vadd.xlane.f32.xlu0 %v1831_v32  ;;  %v4703_v17 = vld [vmem:[#allocation11_spill] sm:$0xff] }
 0x2ac   : > { %v1568_v24 = vpop.xlane.xlu0 %1567  ;;  %v1833_v0 = vmul.f32 %v4210_v47, %v4210_v47 }
 0x2ad   : > { %4699 = vst [vmem:[#allocation26_spill] sm:$0xff] %v4216_v35  ;;  %v4222_v22 = vmul.f32 %v3612_v38, %v1707_v13  ;;  %v1708_v59 = vsub.f32 %v4701_v12, %v1644_v30  ;;  %v1645_v16 = vmul.f32 0.03125, %v1568_v24  ;;  %v1834_v6 = vmul.f32 %v4216_v35, %v4216_v35  ;;  %v4705_v30 = vld [vmem:[#allocation10_spill] sm:$0xff] }
 0x2ae   : > { %v1570_v52 = vpop.xlane.xlu1 %1569 }
 0x2af   : > { %4700 = vst [vmem:[#allocation27_spill] sm:$0xff] %v4222_v22  ;;  %v4228_v40 = vmul.f32 %v3612_v38, %v1708_v59  ;;  %v1709_v37 = vsub.f32 %v4703_v17, %v1645_v16  ;;  %v1646_v32 = vmul.f32 0.03125, %v1570_v52  ;;  %1945 = vadd.xlane.f32.xlu1 %v1834_v6  ;;  %1943 = vadd.xlane.f32.xlu0 %v1833_v0  ;;  %v4707_v16 = vld [vmem:[#allocation13_spill] sm:$0xff] }
 0x2b0   : > { %v1572_v8 = vpop.xlane.xlu0 %1571  ;;  %v1835_v58 = vmul.f32 %v4222_v22, %v4222_v22 }
 0x2b1   : > { %4702 = vst [vmem:[#allocation9_spill] sm:$0xff] %v4228_v40  ;;  %v4234_v13 = vmul.f32 %v3612_v38, %v1709_v37  ;;  %v1710_v24 = vsub.f32 %v4705_v30, %v1646_v32  ;;  %v1647_v12 = vmul.f32 0.03125, %v1572_v8  ;;  %v1836_v47 = vmul.f32 %v4228_v40, %v4228_v40  ;;  %v4709_v32 = vld [vmem:[#allocation12_spill] sm:$0xff] }
 0x2b2   : > { %v1574_v59 = vpop.xlane.xlu1 %1573 }
 0x2b3   : > { %4704 = vst [vmem:[#allocation11_spill] sm:$0xff] %v4234_v13  ;;  %v4240_v35 = vmul.f32 %v3612_v38, %v1710_v24  ;;  %v1711_v6 = vsub.f32 %v4707_v16, %v1647_v12  ;;  %v1648_v0 = vmul.f32 0.03125, %v1574_v59  ;;  %1949 = vadd.xlane.f32.xlu1 %v1836_v47  ;;  %1947 = vadd.xlane.f32.xlu0 %v1835_v58  ;;  %v4711_v12 = vld [vmem:[#allocation15_spill] sm:$0xff] }
 0x2b4   : > { %v1576_v52 = vpop.xlane.xlu0 %1575  ;;  %v1837_v17 = vmul.f32 %v4234_v13, %v4234_v13 }
 0x2b5   : > { %4706 = vst [vmem:[#allocation10_spill] sm:$0xff] %v4240_v35  ;;  %v4246_v37 = vmul.f32 %v3612_v38, %v1711_v6  ;;  %v1712_v8 = vsub.f32 %v4709_v32, %v1648_v0  ;;  %v1649_v30 = vmul.f32 0.03125, %v1576_v52  ;;  %v1838_v22 = vmul.f32 %v4240_v35, %v4240_v35  ;;  %v4713_v0 = vld [vmem:[#allocation14_spill] sm:$0xff] }
 0x2b6   : > { %v1578_v24 = vpop.xlane.xlu1 %1577 }
 0x2b7   : > { %4708 = vst [vmem:[#allocation13_spill] sm:$0xff] %v4246_v37  ;;  %v4252_v40 = vmul.f32 %v3612_v38, %v1712_v8  ;;  %v1713_v47 = vsub.f32 %v4711_v12, %v1649_v30  ;;  %v1650_v58 = vmul.f32 0.03125, %v1578_v24  ;;  %1953 = vadd.xlane.f32.xlu1 %v1838_v22  ;;  %1951 = vadd.xlane.f32.xlu0 %v1837_v17  ;;  %v4715_v30 = vld [vmem:[#allocation17_spill] sm:$0xff] }
 0x2b8   : > { %v1580_v59 = vpop.xlane.xlu0 %1579  ;;  %v1839_v16 = vmul.f32 %v4246_v37, %v4246_v37 }
 0x2b9   : > { %4710 = vst [vmem:[#allocation12_spill] sm:$0xff] %v4252_v40  ;;  %v4258_v6 = vmul.f32 %v3612_v38, %v1713_v47  ;;  %v1714_v52 = vsub.f32 %v4713_v0, %v1650_v58  ;;  %v1651_v32 = vmul.f32 0.03125, %v1580_v59  ;;  %v1840_v13 = vmul.f32 %v4252_v40, %v4252_v40  ;;  %v4717_v58 = vld [vmem:[#allocation16_spill] sm:$0xff] }
 0x2ba   : > { %v1582_v8 = vpop.xlane.xlu1 %1581 }
 0x2bb   : > { %4712 = vst [vmem:[#allocation15_spill] sm:$0xff] %v4258_v6  ;;  %v4264_v35 = vmul.f32 %v3612_v38, %v1714_v52  ;;  %v1715_v22 = vsub.f32 %v4715_v30, %v1651_v32  ;;  %v1652_v17 = vmul.f32 0.03125, %v1582_v8  ;;  %1957 = vadd.xlane.f32.xlu1 %v1840_v13  ;;  %1955 = vadd.xlane.f32.xlu0 %v1839_v16  ;;  %v4719_v32 = vld [vmem:[#allocation19_spill] sm:$0xff] }
 0x2bc   : > { %v1584_v24 = vpop.xlane.xlu0 %1583  ;;  %v1841_v12 = vmul.f32 %v4258_v6, %v4258_v6 }
 0x2bd   : > { %4714 = vst [vmem:[#allocation14_spill] sm:$0xff] %v4264_v35  ;;  %v4270_v47 = vmul.f32 %v3612_v38, %v1715_v22  ;;  %v1716_v59 = vsub.f32 %v4717_v58, %v1652_v17  ;;  %v1653_v0 = vmul.f32 0.03125, %v1584_v24  ;;  %v1842_v37 = vmul.f32 %v4264_v35, %v4264_v35  ;;  %v4721_v17 = vld [vmem:[#allocation18_spill] sm:$0xff] }
 0x2be   : > { %v1586_v52 = vpop.xlane.xlu1 %1585 }
 0x2bf   : > { %4716 = vst [vmem:[#allocation17_spill] sm:$0xff] %v4270_v47  ;;  %v4276_v40 = vmul.f32 %v3612_v38, %v1716_v59  ;;  %v1717_v13 = vsub.f32 %v4719_v32, %v1653_v0  ;;  %v1654_v16 = vmul.f32 0.03125, %v1586_v52  ;;  %1961 = vadd.xlane.f32.xlu1 %v1842_v37  ;;  %1959 = vadd.xlane.f32.xlu0 %v1841_v12  ;;  %v4723_v0 = vld [vmem:[#allocation20_spill] sm:$0xff] }
 0x2c0   : > { %v1588_v8 = vpop.xlane.xlu0 %1587  ;;  %v1843_v30 = vmul.f32 %v4270_v47, %v4270_v47 }
 0x2c1   : > { %4718 = vst [vmem:[#allocation16_spill] sm:$0xff] %v4276_v40  ;;  %v4282_v22 = vmul.f32 %v3612_v38, %v1717_v13  ;;  %v1718_v24 = vsub.f32 %v4721_v17, %v1654_v16  ;;  %v1655_v58 = vmul.f32 0.03125, %v1588_v8  ;;  %v1844_v6 = vmul.f32 %v4276_v40, %v4276_v40  ;;  %v4731_v40 = vld [vmem:[#allocation23_spill] sm:$0xff] }
 0x2c2   : > { %v1590_v59 = vpop.xlane.xlu1 %1589 }
 0x2c3   : > { %4720 = vst [vmem:[#allocation19_spill] sm:$0xff] %v4282_v22  ;;  %v4288_v35 = vmul.f32 %v3612_v38, %v1718_v24  ;;  %v1719_v37 = vsub.f32 %v4723_v0, %v1655_v58  ;;  %v1656_v12 = vmul.f32 0.03125, %v1590_v59  ;;  %1965 = vadd.xlane.f32.xlu1 %v1844_v6  ;;  %1963 = vadd.xlane.f32.xlu0 %v1843_v30  ;;  %v4726_v58 = vld [vmem:[#allocation22_spill] sm:$0xff]  ;;  %v4728_v0 = vld [vmem:[#allocation21_spill] sm:$0xff] }
 0x2c4   : > { %v1592_v52 = vpop.xlane.xlu0 %1591  ;;  %v1845_v32 = vmul.f32 %v4282_v22, %v4282_v22 }
 0x2c5   : > { %4722 = vst [vmem:[#allocation18_spill] sm:$0xff] %v4288_v35  ;;  %v4294_v13 = vmul.f32 %v3612_v38, %v1719_v37  ;;  %v1720_v16 = vsub.f32 %v3913_v18, %v1656_v12  ;;  %v1657_v8 = vmul.f32 0.03125, %v1592_v52  ;;  %v1846_v17 = vmul.f32 %v4288_v35, %v4288_v35 }
 0x2c6   : > { %v1594_v24 = vpop.xlane.xlu1 %1593 }
 0x2c7   : > { %4724 = vst [vmem:[#allocation20_spill] sm:$0xff] %v4294_v13  ;;  %v4300_v47 = vmul.f32 %v3612_v38, %v1720_v16  ;;  %v1721_v6 = vsub.f32 %v4726_v58, %v1657_v8  ;;  %v1658_v30 = vmul.f32 0.03125, %v1594_v24  ;;  %1969 = vadd.xlane.f32.xlu1 %v1846_v17  ;;  %1967 = vadd.xlane.f32.xlu0 %v1845_v32 }
 0x2c8   : > { %v1847_v12 = vmul.f32 %v4294_v13, %v4294_v13 }
 0x2c9   : > { %4725 = vst [vmem:[#allocation28_spill] sm:$0xff] %v4300_v47  ;;  %v4304_v59 = vmul.f32 %v3612_v38, %v1721_v6  ;;  %v1722_v37 = vsub.f32 %v4728_v0, %v1658_v30  ;;  %v1848_v18 = vmul.f32 %v4300_v47, %v4300_v47 }
 0x2cb   : > { %4727 = vst [vmem:[#allocation22_spill] sm:$0xff] %v4304_v59  ;;  %v4312_v52 = vmul.f32 %v3612_v38, %v1722_v37  ;;  %1973 = vadd.xlane.f32.xlu1 %v1848_v18  ;;  %1971 = vadd.xlane.f32.xlu0 %v1847_v12  ;;  %v1849_v32 = vmul.f32 %v4304_v59, %v4304_v59 }
 0x2cd   : > { %4729 = vst [vmem:[#allocation21_spill] sm:$0xff] %v4312_v52  ;;  %v1850_v16 = vmul.f32 %v4312_v52, %v4312_v52 }
 0x2cf   : > { %1977 = vadd.xlane.f32.xlu1 %v1850_v16  ;;  %1975 = vadd.xlane.f32.xlu0 %v1849_v32  ;;  %v4730_v32 = vld [vmem:[#allocation8_spill] sm:$0xff] }
 0x2d0   : > { %v2237_v13 = vsub.s32 2, %v4730_v32 }
 0x2d8   : > { %v1854_v8 = vpop.xlane.xlu1 %1853 }
 0x2d9   : > { %v1980_v17 = vmul.f32 0.03125, %v1854_v8 }
 0x2db   : > { %v2044_v24 = vadd.f32 1e-05, %v1980_v17 }
 0x2dc   : > { %v1858_v58 = vpop.xlane.xlu1 %1857  ;;  %v1852_v6 = vpop.xlane.xlu0 %1851 }
 0x2dd   : > { %3076 = vrsqrt.f32 %v2044_v24  ;;  %v1982_v30 = vmul.f32 0.03125, %v1858_v58  ;;  %v1979_v0 = vmul.f32 0.03125, %v1852_v6  ;;  %v2305_v24 = vsub.s32 3, %v4730_v32 }
 0x2df   : > { %v2046_v38 = vadd.f32 1e-05, %v1982_v30  ;;  %v2043_v37 = vadd.f32 1e-05, %v1979_v0 }
 0x2e0   : > { %v1856_v18 = vpop.xlane.xlu0 %1855 }
 0x2e1   : > { %3078 = vrsqrt.f32 %v2046_v38  ;;  %v1981_v12 = vmul.f32 0.03125, %v1856_v18  ;;  %v3204_v38 = vld [vmem:[%s3534_s11] sm:$0xf] }
 0x2e2   : > { %3080 = vrsqrt.f32 %v2043_v37  ;;  %v4322_v47 = vrot.slane %v3204_v38, %v2237_v13  ;;  %v4324_v22 = vrot.slane %v3204_v38, %v2305_v24 }
 0x2e3   : > { %v2045_v52 = vadd.f32 1e-05, %v1981_v12 }
 0x2e4   : > { %v1862_v59 = vpop.xlane.xlu1 %1861  ;;  %v1860_v16 = vpop.xlane.xlu0 %1859 }
 0x2e5   : > { %3082 = vrsqrt.f32 %v2045_v52  ;;  %v1984_v8 = vmul.f32 0.03125, %v1862_v59  ;;  %v1983_v17 = vmul.f32 0.03125, %v1860_v16 }
 0x2e7   : > { %v2048_v58 = vadd.f32 1e-05, %v1984_v8  ;;  %v2047_v6 = vadd.f32 1e-05, %v1983_v17 }
 0x2e8   : > { %v1866_v30 = vpop.xlane.xlu1 %1865  ;;  %v1864_v0 = vpop.xlane.xlu0 %1863 }
 0x2e9   : > { %3084 = vrsqrt.f32 %v2048_v58  ;;  %v1986_v37 = vmul.f32 0.03125, %v1866_v30  ;;  %v1985_v18 = vmul.f32 0.03125, %v1864_v0 }
 0x2ea   : > { %v3077_v12 = vpop.eup %3076  ;;  %3086 = vrsqrt.f32 %v2047_v6 }
 0x2eb   : > { %v2172_v59 = vmul.f32 %v3077_v12, %v3936_v34  ;;  %v2050_v52 = vadd.f32 1e-05, %v1986_v37  ;;  %v2049_v16 = vadd.f32 1e-05, %v1985_v18 }
 0x2ec   : > { %v1870_v32 = vpop.xlane.xlu1 %1869  ;;  %v1868_v8 = vpop.xlane.xlu0 %1867 }
 0x2ed   : > { %v2240_v17 = vmul.f32 %v4322_v47, %v2172_v59  ;;  %3088 = vrsqrt.f32 %v2050_v52  ;;  %v1988_v13 = vmul.f32 0.03125, %v1870_v32  ;;  %v1987_v35 = vmul.f32 0.03125, %v1868_v8 }
 0x2ee   : > { %v3079_v58 = vpop.eup %3078  ;;  %3090 = vrsqrt.f32 %v2049_v16 }
 0x2ef   : > { %v3081_v30 = vpop.eup %3080  ;;  %v2308_v6 = vadd.f32 %v4324_v22, %v2240_v17  ;;  %v2174_v24 = vmul.f32 %v3079_v58, %v3943_v60  ;;  %v2052_v0 = vadd.f32 1e-05, %v1988_v13  ;;  %v2051_v38 = vadd.f32 1e-05, %v1987_v35 }
 0x2f0   : > { %v2171_v34 = vmul.f32 %v3081_v30, %v4731_v40  ;;  %v1874_v37 = vpop.xlane.xlu1 %1873  ;;  %v1872_v18 = vpop.xlane.xlu0 %1871 }
 0x2f1   : > { %2372 = vst [vmem:[%s4333_s14 + $0x8] sm:$0xff] %v2308_v6  ;;  %v2242_v12 = vmul.f32 %v4322_v47, %v2174_v24  ;;  %3092 = vrsqrt.f32 %v2052_v0  ;;  %v1990_v59 = vmul.f32 0.03125, %v1874_v37  ;;  %v1989_v52 = vmul.f32 0.03125, %v1872_v18 }
 0x2f2   : > { %v3083_v16 = vpop.eup %3082  ;;  %v2239_v60 = vmul.f32 %v4322_v47, %v2171_v34  ;;  %3094 = vrsqrt.f32 %v2051_v38 }
 0x2f3   : > { %v2310_v35 = vadd.f32 %v4324_v22, %v2242_v12  ;;  %v2173_v40 = vmul.f32 %v3083_v16, %v3955_v14  ;;  %v2054_v32 = vadd.f32 1e-05, %v1990_v59  ;;  %v2053_v8 = vadd.f32 1e-05, %v1989_v52 }
 0x2f4   : > { %v2307_v17 = vadd.f32 %v4324_v22, %v2239_v60  ;;  %v1878_v13 = vpop.xlane.xlu1 %1877  ;;  %v1876_v58 = vpop.xlane.xlu0 %1875 }
 0x2f5   : > { %2374 = vst [vmem:[%s4333_s14 + $0x18] sm:$0xff] %v2310_v35  ;;  %v2241_v30 = vmul.f32 %v4322_v47, %v2173_v40  ;;  %3096 = vrsqrt.f32 %v2054_v32  ;;  %v1992_v6 = vmul.f32 0.03125, %v1878_v13  ;;  %v1991_v24 = vmul.f32 0.03125, %v1876_v58 }
 0x2f6   : > { %v3085_v0 = vpop.eup %3084  ;;  %2371 = vst [vmem:[%s4333_s14] sm:$0xff] %v2307_v17  ;;  %3098 = vrsqrt.f32 %v2053_v8 }
 0x2f7   : > { %v3087_v38 = vpop.eup %3086  ;;  %v2309_v34 = vadd.f32 %v4324_v22, %v2241_v30  ;;  %v2176_v14 = vmul.f32 %v3085_v0, %v3965_v7  ;;  %v2056_v37 = vadd.f32 1e-05, %v1992_v6  ;;  %v2055_v18 = vadd.f32 1e-05, %v1991_v24 }
 0x2f8   : > { %v2175_v12 = vmul.f32 %v3087_v38, %v3961_v51  ;;  %v1882_v59 = vpop.xlane.xlu1 %1881  ;;  %v1880_v52 = vpop.xlane.xlu0 %1879 }
 0x2f9   : > { %2373 = vst [vmem:[%s4333_s14 + $0x10] sm:$0xff] %v2309_v34  ;;  %v2244_v16 = vmul.f32 %v4322_v47, %v2176_v14  ;;  %3100 = vrsqrt.f32 %v2056_v37  ;;  %v1994_v60 = vmul.f32 0.03125, %v1882_v59  ;;  %v1993_v35 = vmul.f32 0.03125, %v1880_v52 }
 0x2fa   : > { %v3089_v40 = vpop.eup %3088  ;;  %v2243_v32 = vmul.f32 %v4322_v47, %v2175_v12  ;;  %3102 = vrsqrt.f32 %v2055_v18 }
 0x2fb   : > { %v3091_v8 = vpop.eup %3090  ;;  %v2312_v7 = vadd.f32 %v4324_v22, %v2244_v16  ;;  %v2178_v17 = vmul.f32 %v3089_v40, %v3977_v28  ;;  %v2058_v51 = vadd.f32 1e-05, %v1994_v60  ;;  %v2057_v13 = vadd.f32 1e-05, %v1993_v35 }
 0x2fc   : > { %v2311_v58 = vadd.f32 %v4324_v22, %v2243_v32  ;;  %v2177_v30 = vmul.f32 %v3091_v8, %v3973_v63  ;;  %v1886_v6 = vpop.xlane.xlu1 %1885  ;;  %v1884_v24 = vpop.xlane.xlu0 %1883 }
 0x2fd   : > { %2376 = vst [vmem:[%s4333_s14 + $0x28] sm:$0xff] %v2312_v7  ;;  %v2246_v0 = vmul.f32 %v4322_v47, %v2178_v17  ;;  %3104 = vrsqrt.f32 %v2058_v51  ;;  %v1996_v38 = vmul.f32 0.03125, %v1886_v6  ;;  %v1995_v34 = vmul.f32 0.03125, %v1884_v24 }
 0x2fe   : > { %v3093_v14 = vpop.eup %3092  ;;  %2375 = vst [vmem:[%s4333_s14 + $0x20] sm:$0xff] %v2311_v58  ;;  %v2245_v37 = vmul.f32 %v4322_v47, %v2177_v30  ;;  %3106 = vrsqrt.f32 %v2057_v13 }
 0x2ff   : > { %v3095_v28 = vpop.eup %3094  ;;  %v2314_v18 = vadd.f32 %v4324_v22, %v2246_v0  ;;  %v2180_v63 = vmul.f32 %v3093_v14, %v3989_v49  ;;  %v2060_v12 = vadd.f32 1e-05, %v1996_v38  ;;  %v2059_v59 = vadd.f32 1e-05, %v1995_v34 }
 0x300   : > { %v2313_v52 = vadd.f32 %v4324_v22, %v2245_v37  ;;  %v2179_v16 = vmul.f32 %v3095_v28, %v3985_v50  ;;  %v1890_v60 = vpop.xlane.xlu1 %1889  ;;  %v1888_v35 = vpop.xlane.xlu0 %1887 }
 0x301   : > { %2378 = vst [vmem:[%s4333_s14 + $0x38] sm:$0xff] %v2314_v18  ;;  %v2248_v40 = vmul.f32 %v4322_v47, %v2180_v63  ;;  %3108 = vrsqrt.f32 %v2060_v12  ;;  %v1998_v32 = vmul.f32 0.03125, %v1890_v60  ;;  %v1997_v8 = vmul.f32 0.03125, %v1888_v35 }
 0x302   : > { %v3097_v7 = vpop.eup %3096  ;;  %2377 = vst [vmem:[%s4333_s14 + $0x30] sm:$0xff] %v2313_v52  ;;  %v2247_v17 = vmul.f32 %v4322_v47, %v2179_v16  ;;  %3110 = vrsqrt.f32 %v2059_v59 }
 0x303   : > { %v3099_v49 = vpop.eup %3098  ;;  %v2316_v51 = vadd.f32 %v4324_v22, %v2248_v40  ;;  %v2182_v50 = vmul.f32 %v3097_v7, %v4001_v48  ;;  %v2062_v13 = vadd.f32 1e-05, %v1998_v32  ;;  %v2061_v58 = vadd.f32 1e-05, %v1997_v8 }
 0x304   : > { %v2315_v30 = vadd.f32 %v4324_v22, %v2247_v17  ;;  %v2181_v6 = vmul.f32 %v3099_v49, %v3997_v2  ;;  %v1894_v24 = vpop.xlane.xlu1 %1893  ;;  %v1892_v0 = vpop.xlane.xlu0 %1891 }
 0x305   : > { %2380 = vst [vmem:[%s4333_s14 + $0x48] sm:$0xff] %v2316_v51  ;;  %v2250_v38 = vmul.f32 %v4322_v47, %v2182_v50  ;;  %3112 = vrsqrt.f32 %v2062_v13  ;;  %v2000_v34 = vmul.f32 0.03125, %v1894_v24  ;;  %v1999_v14 = vmul.f32 0.03125, %v1892_v0 }
 0x306   : > { %v3101_v37 = vpop.eup %3100  ;;  %2379 = vst [vmem:[%s4333_s14 + $0x40] sm:$0xff] %v2315_v30  ;;  %v2249_v28 = vmul.f32 %v4322_v47, %v2181_v6  ;;  %3114 = vrsqrt.f32 %v2061_v58 }
 0x307   : > { %v3103_v48 = vpop.eup %3102  ;;  %v2318_v18 = vadd.f32 %v4324_v22, %v2250_v38  ;;  %v2184_v2 = vmul.f32 %v3101_v37, %v4013_v36  ;;  %v2064_v63 = vadd.f32 1e-05, %v2000_v34  ;;  %v2063_v12 = vadd.f32 1e-05, %v1999_v14 }
 0x308   : > { %v2317_v59 = vadd.f32 %v4324_v22, %v2249_v28  ;;  %v2183_v52 = vmul.f32 %v3103_v48, %v4009_v43  ;;  %v1898_v16 = vpop.xlane.xlu1 %1897  ;;  %v1896_v60 = vpop.xlane.xlu0 %1895 }
 0x309   : > { %2382 = vst [vmem:[%s4333_s14 + $0x58] sm:$0xff] %v2318_v18  ;;  %v2252_v35 = vmul.f32 %v4322_v47, %v2184_v2  ;;  %3116 = vrsqrt.f32 %v2064_v63  ;;  %v2002_v40 = vmul.f32 0.03125, %v1898_v16  ;;  %v2001_v32 = vmul.f32 0.03125, %v1896_v60 }
 0x30a   : > { %v3105_v8 = vpop.eup %3104  ;;  %2381 = vst [vmem:[%s4333_s14 + $0x50] sm:$0xff] %v2317_v59  ;;  %v2251_v7 = vmul.f32 %v4322_v47, %v2183_v52  ;;  %3118 = vrsqrt.f32 %v2063_v12 }
 0x30b   : > { %v3107_v36 = vpop.eup %3106  ;;  %v2320_v17 = vadd.f32 %v4324_v22, %v2252_v35  ;;  %v2186_v43 = vmul.f32 %v3105_v8, %v4025_v21  ;;  %v2066_v49 = vadd.f32 1e-05, %v2002_v40  ;;  %v2065_v51 = vadd.f32 1e-05, %v2001_v32 }
 0x30c   : > { %v2319_v50 = vadd.f32 %v4324_v22, %v2251_v7  ;;  %v2185_v13 = vmul.f32 %v3107_v36, %v4021_v55  ;;  %v1902_v58 = vpop.xlane.xlu1 %1901  ;;  %v1900_v30 = vpop.xlane.xlu0 %1899 }
 0x30d   : > { %2384 = vst [vmem:[%s4333_s14 + $0x68] sm:$0xff] %v2320_v17  ;;  %v2254_v6 = vmul.f32 %v4322_v47, %v2186_v43  ;;  %3120 = vrsqrt.f32 %v2066_v49  ;;  %v2004_v24 = vmul.f32 0.03125, %v1902_v58  ;;  %v2003_v0 = vmul.f32 0.03125, %v1900_v30 }
 0x30e   : > { %v3109_v38 = vpop.eup %3108  ;;  %2383 = vst [vmem:[%s4333_s14 + $0x60] sm:$0xff] %v2319_v50  ;;  %v2253_v34 = vmul.f32 %v4322_v47, %v2185_v13  ;;  %3122 = vrsqrt.f32 %v2065_v51 }
 0x30f   : > { %v3111_v21 = vpop.eup %3110  ;;  %v2322_v14 = vadd.f32 %v4324_v22, %v2254_v6  ;;  %v2188_v55 = vmul.f32 %v3109_v38, %v4037_v56  ;;  %v2068_v37 = vadd.f32 1e-05, %v2004_v24  ;;  %v2067_v28 = vadd.f32 1e-05, %v2003_v0 }
 0x310   : > { %v2321_v48 = vadd.f32 %v4324_v22, %v2253_v34  ;;  %v2187_v18 = vmul.f32 %v3111_v21, %v4033_v61  ;;  %v1906_v2 = vpop.xlane.xlu1 %1905  ;;  %v1904_v63 = vpop.xlane.xlu0 %1903 }
 0x311   : > { %2386 = vst [vmem:[%s4333_s14 + $0x78] sm:$0xff] %v2322_v14  ;;  %v2256_v12 = vmul.f32 %v4322_v47, %v2188_v55  ;;  %3124 = vrsqrt.f32 %v2068_v37  ;;  %v2006_v59 = vmul.f32 0.03125, %v1906_v2  ;;  %v2005_v52 = vmul.f32 0.03125, %v1904_v63 }
 0x312   : > { %v3113_v16 = vpop.eup %3112  ;;  %2385 = vst [vmem:[%s4333_s14 + $0x70] sm:$0xff] %v2321_v48  ;;  %v2255_v60 = vmul.f32 %v4322_v47, %v2187_v18  ;;  %3126 = vrsqrt.f32 %v2067_v28 }
 0x313   : > { %v3115_v56 = vpop.eup %3114  ;;  %v2324_v35 = vadd.f32 %v4324_v22, %v2256_v12  ;;  %v2190_v61 = vmul.f32 %v3113_v16, %v4049_v45  ;;  %v2070_v40 = vadd.f32 1e-05, %v2006_v59  ;;  %v2069_v32 = vadd.f32 1e-05, %v2005_v52 }
 0x314   : > { %v2323_v8 = vadd.f32 %v4324_v22, %v2255_v60  ;;  %v2189_v7 = vmul.f32 %v3115_v56, %v4045_v3  ;;  %v1910_v36 = vpop.xlane.xlu1 %1909  ;;  %v1908_v17 = vpop.xlane.xlu0 %1907 }
 0x315   : > { %2388 = vst [vmem:[%s4333_s14 + $0x88] sm:$0xff] %v2324_v35  ;;  %v2258_v43 = vmul.f32 %v4322_v47, %v2190_v61  ;;  %3128 = vrsqrt.f32 %v2070_v40  ;;  %v2008_v49 = vmul.f32 0.03125, %v1910_v36  ;;  %v2007_v51 = vmul.f32 0.03125, %v1908_v17 }
 0x316   : > { %v3117_v50 = vpop.eup %3116  ;;  %2387 = vst [vmem:[%s4333_s14 + $0x80] sm:$0xff] %v2323_v8  ;;  %v2257_v13 = vmul.f32 %v4322_v47, %v2189_v7  ;;  %3130 = vrsqrt.f32 %v2069_v32 }
 0x317   : > { %v3119_v45 = vpop.eup %3118  ;;  %v2326_v58 = vadd.f32 %v4324_v22, %v2258_v43  ;;  %v2192_v3 = vmul.f32 %v3117_v50, %v4061_v44  ;;  %v2072_v30 = vadd.f32 1e-05, %v2008_v49  ;;  %v2071_v6 = vadd.f32 1e-05, %v2007_v51 }
 0x318   : > { %v2325_v24 = vadd.f32 %v4324_v22, %v2257_v13  ;;  %v2191_v0 = vmul.f32 %v3119_v45, %v4057_v9  ;;  %v1914_v38 = vpop.xlane.xlu1 %1913  ;;  %v1912_v34 = vpop.xlane.xlu0 %1911 }
 0x319   : > { %2390 = vst [vmem:[%s4333_s14 + $0x98] sm:$0xff] %v2326_v58  ;;  %v2260_v21 = vmul.f32 %v4322_v47, %v2192_v3  ;;  %3132 = vrsqrt.f32 %v2072_v30  ;;  %v2010_v14 = vmul.f32 0.03125, %v1914_v38  ;;  %v2009_v55 = vmul.f32 0.03125, %v1912_v34 }
 0x31a   : > { %v3121_v37 = vpop.eup %3120  ;;  %2389 = vst [vmem:[%s4333_s14 + $0x90] sm:$0xff] %v2325_v24  ;;  %v2259_v28 = vmul.f32 %v4322_v47, %v2191_v0  ;;  %3134 = vrsqrt.f32 %v2071_v6 }
 0x31b   : > { %v3123_v44 = vpop.eup %3122  ;;  %v2328_v48 = vadd.f32 %v4324_v22, %v2260_v21  ;;  %v2194_v9 = vmul.f32 %v3121_v37, %v4073_v41  ;;  %v2074_v18 = vadd.f32 1e-05, %v2010_v14  ;;  %v2073_v2 = vadd.f32 1e-05, %v2009_v55 }
 0x31c   : > { %v2327_v63 = vadd.f32 %v4324_v22, %v2259_v28  ;;  %v2193_v12 = vmul.f32 %v3123_v44, %v4069_v15  ;;  %v1918_v59 = vpop.xlane.xlu1 %1917  ;;  %v1916_v52 = vpop.xlane.xlu0 %1915 }
 0x31d   : > { %2392 = vst [vmem:[%s4333_s14 + $0xa8] sm:$0xff] %v2328_v48  ;;  %v2262_v16 = vmul.f32 %v4322_v47, %v2194_v9  ;;  %3136 = vrsqrt.f32 %v2074_v18  ;;  %v2012_v60 = vmul.f32 0.03125, %v1918_v59  ;;  %v2011_v56 = vmul.f32 0.03125, %v1916_v52 }
 0x31e   : > { %v3125_v35 = vpop.eup %3124  ;;  %2391 = vst [vmem:[%s4333_s14 + $0xa0] sm:$0xff] %v2327_v63  ;;  %v2261_v61 = vmul.f32 %v4322_v47, %v2193_v12  ;;  %3138 = vrsqrt.f32 %v2073_v2 }
 0x31f   : > { %v3127_v41 = vpop.eup %3126  ;;  %v2330_v40 = vadd.f32 %v4324_v22, %v2262_v16  ;;  %v2196_v15 = vmul.f32 %v3125_v35, %v4085_v29  ;;  %v2076_v32 = vadd.f32 1e-05, %v2012_v60  ;;  %v2075_v8 = vadd.f32 1e-05, %v2011_v56 }
 0x320   : > { %v2329_v7 = vadd.f32 %v4324_v22, %v2261_v61  ;;  %v2195_v36 = vmul.f32 %v3127_v41, %v4081_v25  ;;  %v1922_v17 = vpop.xlane.xlu1 %1921  ;;  %v1920_v43 = vpop.xlane.xlu0 %1919 }
 0x321   : > { %2394 = vst [vmem:[%s4333_s14 + $0xb8] sm:$0xff] %v2330_v40  ;;  %v2264_v49 = vmul.f32 %v4322_v47, %v2196_v15  ;;  %3140 = vrsqrt.f32 %v2076_v32  ;;  %v2014_v51 = vmul.f32 0.03125, %v1922_v17  ;;  %v2013_v50 = vmul.f32 0.03125, %v1920_v43 }
 0x322   : > { %v3129_v13 = vpop.eup %3128  ;;  %2393 = vst [vmem:[%s4333_s14 + $0xb0] sm:$0xff] %v2329_v7  ;;  %v2263_v45 = vmul.f32 %v4322_v47, %v2195_v36  ;;  %3142 = vrsqrt.f32 %v2075_v8 }
 0x323   : > { %v3131_v29 = vpop.eup %3130  ;;  %v2332_v58 = vadd.f32 %v4324_v22, %v2264_v49  ;;  %v2198_v25 = vmul.f32 %v3129_v13, %v4097_v27  ;;  %v2078_v3 = vadd.f32 1e-05, %v2014_v51  ;;  %v2077_v30 = vadd.f32 1e-05, %v2013_v50 }
 0x324   : > { %v2331_v6 = vadd.f32 %v4324_v22, %v2263_v45  ;;  %v2197_v24 = vmul.f32 %v3131_v29, %v4093_v31  ;;  %v1926_v0 = vpop.xlane.xlu1 %1925  ;;  %v1924_v38 = vpop.xlane.xlu0 %1923 }
 0x325   : > { %2396 = vst [vmem:[%s4333_s14 + $0xc8] sm:$0xff] %v2332_v58  ;;  %v2266_v34 = vmul.f32 %v4322_v47, %v2198_v25  ;;  %3144 = vrsqrt.f32 %v2078_v3  ;;  %v2016_v21 = vmul.f32 0.03125, %v1926_v0  ;;  %v2015_v14 = vmul.f32 0.03125, %v1924_v38 }
 0x326   : > { %v3133_v55 = vpop.eup %3132  ;;  %2395 = vst [vmem:[%s4333_s14 + $0xc0] sm:$0xff] %v2331_v6  ;;  %v2265_v37 = vmul.f32 %v4322_v47, %v2197_v24  ;;  %3146 = vrsqrt.f32 %v2077_v30 }
 0x327   : > { %v3135_v27 = vpop.eup %3134  ;;  %v2334_v28 = vadd.f32 %v4324_v22, %v2266_v34  ;;  %v2200_v31 = vmul.f32 %v3133_v55, %v4109_v62  ;;  %v2080_v44 = vadd.f32 1e-05, %v2016_v21  ;;  %v2079_v48 = vadd.f32 1e-05, %v2015_v14 }
 0x328   : > { %v2333_v9 = vadd.f32 %v4324_v22, %v2265_v37  ;;  %v2199_v18 = vmul.f32 %v3135_v27, %v4105_v39  ;;  %v1930_v2 = vpop.xlane.xlu1 %1929  ;;  %v1928_v63 = vpop.xlane.xlu0 %1927 }
 0x329   : > { %2398 = vst [vmem:[%s4333_s14 + $0xd8] sm:$0xff] %v2334_v28  ;;  %v2268_v12 = vmul.f32 %v4322_v47, %v2200_v31  ;;  %3148 = vrsqrt.f32 %v2080_v44  ;;  %v2018_v59 = vmul.f32 0.03125, %v1930_v2  ;;  %v2017_v52 = vmul.f32 0.03125, %v1928_v63 }
 0x32a   : > { %v3137_v16 = vpop.eup %3136  ;;  %2397 = vst [vmem:[%s4333_s14 + $0xd0] sm:$0xff] %v2333_v9  ;;  %v2267_v60 = vmul.f32 %v4322_v47, %v2199_v18  ;;  %3150 = vrsqrt.f32 %v2079_v48 }
 0x32b   : > { %v3139_v62 = vpop.eup %3138  ;;  %v2336_v56 = vadd.f32 %v4324_v22, %v2268_v12  ;;  %v2202_v39 = vmul.f32 %v3137_v16, %v4121_v4  ;;  %v2082_v35 = vadd.f32 1e-05, %v2018_v59  ;;  %v2081_v61 = vadd.f32 1e-05, %v2017_v52 }
 0x32c   : > { %v2335_v41 = vadd.f32 %v4324_v22, %v2267_v60  ;;  %v2201_v40 = vmul.f32 %v3139_v62, %v4117_v46  ;;  %v1934_v15 = vpop.xlane.xlu1 %1933  ;;  %v1932_v32 = vpop.xlane.xlu0 %1931 }
 0x32d   : > { %2400 = vst [vmem:[%s4333_s14 + $0xe8] sm:$0xff] %v2336_v56  ;;  %v2270_v8 = vmul.f32 %v4322_v47, %v2202_v39  ;;  %3152 = vrsqrt.f32 %v2082_v35  ;;  %v2020_v7 = vmul.f32 0.03125, %v1934_v15  ;;  %v2019_v36 = vmul.f32 0.03125, %v1932_v32 }
 0x32e   : > { %v3141_v17 = vpop.eup %3140  ;;  %2399 = vst [vmem:[%s4333_s14 + $0xe0] sm:$0xff] %v2335_v41  ;;  %v2269_v43 = vmul.f32 %v4322_v47, %v2201_v40  ;;  %3154 = vrsqrt.f32 %v2081_v61 }
 0x32f   : > { %v3143_v4 = vpop.eup %3142  ;;  %v2338_v49 = vadd.f32 %v4324_v22, %v2270_v8  ;;  %v2204_v46 = vmul.f32 %v3141_v17, %v4133_v10  ;;  %v2084_v51 = vadd.f32 1e-05, %v2020_v7  ;;  %v2083_v50 = vadd.f32 1e-05, %v2019_v36 }
 0x330   : > { %v2337_v13 = vadd.f32 %v4324_v22, %v2269_v43  ;;  %v2203_v45 = vmul.f32 %v3143_v4, %v4129_v54  ;;  %v1938_v29 = vpop.xlane.xlu1 %1937  ;;  %v1936_v58 = vpop.xlane.xlu0 %1935 }
 0x331   : > { %2402 = vst [vmem:[%s4333_s14 + $0xf8] sm:$0xff] %v2338_v49  ;;  %v2272_v25 = vmul.f32 %v4322_v47, %v2204_v46  ;;  %3156 = vrsqrt.f32 %v2084_v51  ;;  %v2022_v3 = vmul.f32 0.03125, %v1938_v29  ;;  %v2021_v30 = vmul.f32 0.03125, %v1936_v58 }
 0x332   : > { %v3145_v6 = vpop.eup %3144  ;;  %2401 = vst [vmem:[%s4333_s14 + $0xf0] sm:$0xff] %v2337_v13  ;;  %v2271_v24 = vmul.f32 %v4322_v47, %v2203_v45  ;;  %3158 = vrsqrt.f32 %v2083_v50 }
 0x333   : > { %v3147_v10 = vpop.eup %3146  ;;  %v2340_v0 = vadd.f32 %v4324_v22, %v2272_v25  ;;  %v2206_v54 = vmul.f32 %v3145_v6, %v4144_v57  ;;  %v2086_v38 = vadd.f32 1e-05, %v2022_v3  ;;  %v2085_v34 = vadd.f32 1e-05, %v2021_v30 }
 0x334   : > { %v2339_v21 = vadd.f32 %v4324_v22, %v2271_v24  ;;  %v2205_v14 = vmul.f32 %v3147_v10, %v4138_v26  ;;  %v1942_v55 = vpop.xlane.xlu1 %1941  ;;  %v1940_v37 = vpop.xlane.xlu0 %1939 }
 0x335   : > { %2404 = vst [vmem:[%s4333_s14 + $0x108] sm:$0xff] %v2340_v0  ;;  %v2274_v27 = vmul.f32 %v4322_v47, %v2206_v54  ;;  %3160 = vrsqrt.f32 %v2086_v38  ;;  %v2024_v28 = vmul.f32 0.03125, %v1942_v55  ;;  %v2023_v31 = vmul.f32 0.03125, %v1940_v37 }
 0x336   : > { %v3149_v44 = vpop.eup %3148  ;;  %2403 = vst [vmem:[%s4333_s14 + $0x100] sm:$0xff] %v2339_v21  ;;  %v2273_v48 = vmul.f32 %v4322_v47, %v2205_v14  ;;  %3162 = vrsqrt.f32 %v2085_v34 }
 0x337   : > { %v3151_v57 = vpop.eup %3150  ;;  %v2342_v9 = vadd.f32 %v4324_v22, %v2274_v27  ;;  %v2208_v26 = vmul.f32 %v3149_v44, %v4156_v23  ;;  %v2088_v18 = vadd.f32 1e-05, %v2024_v28  ;;  %v2087_v2 = vadd.f32 1e-05, %v2023_v31 }
 0x338   : > { %v2341_v63 = vadd.f32 %v4324_v22, %v2273_v48  ;;  %v2207_v12 = vmul.f32 %v3151_v57, %v4150_v33  ;;  %v1946_v59 = vpop.xlane.xlu1 %1945  ;;  %v1944_v52 = vpop.xlane.xlu0 %1943 }
 0x339   : > { %2406 = vst [vmem:[%s4333_s14 + $0x118] sm:$0xff] %v2342_v9  ;;  %v2276_v16 = vmul.f32 %v4322_v47, %v2208_v26  ;;  %3164 = vrsqrt.f32 %v2088_v18  ;;  %v2026_v60 = vmul.f32 0.03125, %v1946_v59  ;;  %v2025_v62 = vmul.f32 0.03125, %v1944_v52  ;;  %v4732_v9 = vld [vmem:[#allocation24_spill] sm:$0xff] }
 0x33a   : > { %v3153_v56 = vpop.eup %3152  ;;  %2405 = vst [vmem:[%s4333_s14 + $0x110] sm:$0xff] %v2341_v63  ;;  %v2275_v39 = vmul.f32 %v4322_v47, %v2207_v12  ;;  %3166 = vrsqrt.f32 %v2087_v2 }
 0x33b   : > { %v3155_v23 = vpop.eup %3154  ;;  %v2344_v35 = vadd.f32 %v4324_v22, %v2276_v16  ;;  %v2210_v33 = vmul.f32 %v3153_v56, %v4168_v42  ;;  %v2090_v61 = vadd.f32 1e-05, %v2026_v60  ;;  %v2089_v41 = vadd.f32 1e-05, %v2025_v62  ;;  %v4733_v62 = vld [vmem:[#allocation26_spill] sm:$0xff] }
 0x33c   : > { %v2343_v40 = vadd.f32 %v4324_v22, %v2275_v39  ;;  %v2209_v15 = vmul.f32 %v3155_v23, %v4162_v20  ;;  %v1950_v32 = vpop.xlane.xlu1 %1949  ;;  %v1948_v8 = vpop.xlane.xlu0 %1947 }
 0x33d   : > { %2408 = vst [vmem:[%s4333_s14 + $0x128] sm:$0xff] %v2344_v35  ;;  %v2278_v7 = vmul.f32 %v4322_v47, %v2210_v33  ;;  %3168 = vrsqrt.f32 %v2090_v61  ;;  %v2028_v36 = vmul.f32 0.03125, %v1950_v32  ;;  %v2027_v17 = vmul.f32 0.03125, %v1948_v8  ;;  %v4734_v33 = vld [vmem:[#allocation25_spill] sm:$0xff] }
 0x33e   : > { %v3157_v43 = vpop.eup %3156  ;;  %2407 = vst [vmem:[%s4333_s14 + $0x120] sm:$0xff] %v2343_v40  ;;  %v2277_v4 = vmul.f32 %v4322_v47, %v2209_v15  ;;  %3170 = vrsqrt.f32 %v2089_v41 }
 0x33f   : > { %v3159_v42 = vpop.eup %3158  ;;  %v2346_v49 = vadd.f32 %v4324_v22, %v2278_v7  ;;  %v2212_v20 = vmul.f32 %v3157_v43, %v4180_v53  ;;  %v2092_v46 = vadd.f32 1e-05, %v2028_v36  ;;  %v2091_v51 = vadd.f32 1e-05, %v2027_v17 }
 0x340   : > { %v2345_v50 = vadd.f32 %v4324_v22, %v2277_v4  ;;  %v2211_v13 = vmul.f32 %v3159_v42, %v4174_v1  ;;  %v1954_v45 = vpop.xlane.xlu1 %1953  ;;  %v1952_v29 = vpop.xlane.xlu0 %1951  ;;  %v4735_v4 = vld [vmem:[#allocation9_spill] sm:$0xff] }
 0x341   : > { %2410 = vst [vmem:[%s4333_s14 + $0x138] sm:$0xff] %v2346_v49  ;;  %v2280_v58 = vmul.f32 %v4322_v47, %v2212_v20  ;;  %3172 = vrsqrt.f32 %v2092_v46  ;;  %v2030_v25 = vmul.f32 0.03125, %v1954_v45  ;;  %v2029_v3 = vmul.f32 0.03125, %v1952_v29 }
 0x342   : > { %v3161_v30 = vpop.eup %3160  ;;  %2409 = vst [vmem:[%s4333_s14 + $0x130] sm:$0xff] %v2345_v50  ;;  %v2279_v6 = vmul.f32 %v4322_v47, %v2211_v13  ;;  %3174 = vrsqrt.f32 %v2091_v51  ;;  %v4736_v51 = vld [vmem:[#allocation27_spill] sm:$0xff] }
 0x343   : > { %v3163_v53 = vpop.eup %3162  ;;  %v2348_v24 = vadd.f32 %v4324_v22, %v2280_v58  ;;  %v2214_v1 = vmul.f32 %v3161_v30, %v4192_v5  ;;  %v2094_v10 = vadd.f32 1e-05, %v2030_v25  ;;  %v2093_v0 = vadd.f32 1e-05, %v2029_v3 }
 0x344   : > { %v2347_v54 = vadd.f32 %v4324_v22, %v2279_v6  ;;  %v2213_v38 = vmul.f32 %v3163_v53, %v4186_v11  ;;  %v1958_v34 = vpop.xlane.xlu1 %1957  ;;  %v1956_v21 = vpop.xlane.xlu0 %1955 }
 0x345   : > { %2412 = vst [vmem:[%s4333_s14 + $0x148] sm:$0xff] %v2348_v24  ;;  %v2282_v14 = vmul.f32 %v4322_v47, %v2214_v1  ;;  %3176 = vrsqrt.f32 %v2094_v10  ;;  %v2032_v55 = vmul.f32 0.03125, %v1958_v34  ;;  %v2031_v37 = vmul.f32 0.03125, %v1956_v21  ;;  %v4737_v24 = vld [vmem:[#allocation10_spill] sm:$0xff] }
 0x346   : > { %v3165_v27 = vpop.eup %3164  ;;  %2411 = vst [vmem:[%s4333_s14 + $0x140] sm:$0xff] %v2347_v54  ;;  %v2281_v28 = vmul.f32 %v4322_v47, %v2213_v38  ;;  %3178 = vrsqrt.f32 %v2093_v0  ;;  %v4738_v38 = vld [vmem:[#allocation11_spill] sm:$0xff] }
 0x347   : > { %v3167_v5 = vpop.eup %3166  ;;  %v2350_v31 = vadd.f32 %v4324_v22, %v2282_v14  ;;  %v2216_v11 = vmul.f32 %v3165_v27, %v4204_v19  ;;  %v2096_v44 = vadd.f32 1e-05, %v2032_v55  ;;  %v2095_v48 = vadd.f32 1e-05, %v2031_v37 }
 0x348   : > { %v2349_v57 = vadd.f32 %v4324_v22, %v2281_v28  ;;  %v2215_v26 = vmul.f32 %v3167_v5, %v4732_v9  ;;  %v1962_v18 = vpop.xlane.xlu1 %1961  ;;  %v1960_v2 = vpop.xlane.xlu0 %1959 }
 0x349   : > { %2414 = vst [vmem:[%s4333_s14 + $0x158] sm:$0xff] %v2350_v31  ;;  %v2284_v63 = vmul.f32 %v4322_v47, %v2216_v11  ;;  %3180 = vrsqrt.f32 %v2096_v44  ;;  %v2034_v12 = vmul.f32 0.03125, %v1962_v18  ;;  %v2033_v59 = vmul.f32 0.03125, %v1960_v2  ;;  %v4739_v44 = vld [vmem:[#allocation12_spill] sm:$0xff]  ;;  %v4740_v18 = vld [vmem:[#allocation13_spill] sm:$0xff] }
 0x34a   : > { %v3169_v52 = vpop.eup %3168  ;;  %2413 = vst [vmem:[%s4333_s14 + $0x150] sm:$0xff] %v2349_v57  ;;  %v2283_v16 = vmul.f32 %v4322_v47, %v2215_v26  ;;  %3182 = vrsqrt.f32 %v2095_v48 }
 0x34b   : > { %v3171_v19 = vpop.eup %3170  ;;  %v2352_v60 = vadd.f32 %v4324_v22, %v2284_v63  ;;  %v2218_v56 = vmul.f32 %v3169_v52, %v4733_v62  ;;  %v2098_v39 = vadd.f32 1e-05, %v2034_v12  ;;  %v2097_v23 = vadd.f32 1e-05, %v2033_v59 }
 0x34c   : > { %v2351_v35 = vadd.f32 %v4324_v22, %v2283_v16  ;;  %v2217_v61 = vmul.f32 %v3171_v19, %v4734_v33  ;;  %v1966_v41 = vpop.xlane.xlu1 %1965  ;;  %v1964_v40 = vpop.xlane.xlu0 %1963 }
 0x34d   : > { %2416 = vst [vmem:[%s4333_s14 + $0x168] sm:$0xff] %v2352_v60  ;;  %v2286_v15 = vmul.f32 %v4322_v47, %v2218_v56  ;;  %3184 = vrsqrt.f32 %v2098_v39  ;;  %v2036_v32 = vmul.f32 0.03125, %v1966_v41  ;;  %v2035_v8 = vmul.f32 0.03125, %v1964_v40  ;;  %v4741_v39 = vld [vmem:[#allocation14_spill] sm:$0xff]  ;;  %v4742_v41 = vld [vmem:[#allocation15_spill] sm:$0xff] }
 0x34e   : > { %v3173_v7 = vpop.eup %3172  ;;  %2415 = vst [vmem:[%s4333_s14 + $0x160] sm:$0xff] %v2351_v35  ;;  %v2285_v36 = vmul.f32 %v4322_v47, %v2217_v61  ;;  %3186 = vrsqrt.f32 %v2097_v23 }
 0x34f   : > { %v3175_v17 = vpop.eup %3174  ;;  %v2354_v43 = vadd.f32 %v4324_v22, %v2286_v15  ;;  %v2220_v42 = vmul.f32 %v3173_v7, %v4735_v4  ;;  %v2100_v49 = vadd.f32 1e-05, %v2036_v32  ;;  %v2099_v20 = vadd.f32 1e-05, %v2035_v8 }
 0x350   : > { %v2353_v46 = vadd.f32 %v4324_v22, %v2285_v36  ;;  %v2219_v50 = vmul.f32 %v3175_v17, %v4736_v51  ;;  %v1970_v13 = vpop.xlane.xlu1 %1969  ;;  %v1968_v45 = vpop.xlane.xlu0 %1967  ;;  %v4743_v17 = vld [vmem:[#allocation16_spill] sm:$0xff] }
 0x351   : > { %2418 = vst [vmem:[%s4333_s14 + $0x178] sm:$0xff] %v2354_v43  ;;  %v2288_v29 = vmul.f32 %v4322_v47, %v2220_v42  ;;  %3188 = vrsqrt.f32 %v2100_v49  ;;  %v2038_v58 = vmul.f32 0.03125, %v1970_v13  ;;  %v2037_v25 = vmul.f32 0.03125, %v1968_v45  ;;  %v4744_v42 = vld [vmem:[#allocation17_spill] sm:$0xff]  ;;  %v4745_v45 = vld [vmem:[#allocation18_spill] sm:$0xff] }
 0x352   : > { %v3177_v3 = vpop.eup %3176  ;;  %2417 = vst [vmem:[%s4333_s14 + $0x170] sm:$0xff] %v2353_v46  ;;  %v2287_v30 = vmul.f32 %v4322_v47, %v2219_v50  ;;  %3190 = vrsqrt.f32 %v2099_v20 }
 0x353   : > { %v3179_v6 = vpop.eup %3178  ;;  %v2356_v53 = vadd.f32 %v4324_v22, %v2288_v29  ;;  %v2222_v1 = vmul.f32 %v3177_v3, %v4737_v24  ;;  %v2102_v10 = vadd.f32 1e-05, %v2038_v58  ;;  %v2101_v0 = vadd.f32 1e-05, %v2037_v25  ;;  %v4746_v25 = vld [vmem:[#allocation19_spill] sm:$0xff] }
 0x354   : > { %v2355_v54 = vadd.f32 %v4324_v22, %v2287_v30  ;;  %v2221_v34 = vmul.f32 %v3179_v6, %v4738_v38  ;;  %v1974_v21 = vpop.xlane.xlu1 %1973  ;;  %v1972_v14 = vpop.xlane.xlu0 %1971  ;;  %v4748_v38 = vld [vmem:[#allocation20_spill] sm:$0xff] }
 0x355   : > { %2420 = vst [vmem:[%s4333_s14 + $0x188] sm:$0xff] %v2356_v53  ;;  %v2290_v55 = vmul.f32 %v4322_v47, %v2222_v1  ;;  %3192 = vrsqrt.f32 %v2102_v10  ;;  %v2040_v37 = vmul.f32 0.03125, %v1974_v21  ;;  %v2039_v27 = vmul.f32 0.03125, %v1972_v14  ;;  %v4747_v10 = vld [vmem:[#allocation28_spill] sm:$0xff] }
 0x356   : > { %v3181_v28 = vpop.eup %3180  ;;  %2419 = vst [vmem:[%s4333_s14 + $0x180] sm:$0xff] %v2355_v54  ;;  %v2289_v5 = vmul.f32 %v4322_v47, %v2221_v34  ;;  %3194 = vrsqrt.f32 %v2101_v0 }
 0x357   : > { %v3183_v31 = vpop.eup %3182  ;;  %v2358_v11 = vadd.f32 %v4324_v22, %v2290_v55  ;;  %v2224_v48 = vmul.f32 %v3181_v28, %v4739_v44  ;;  %v2104_v57 = vadd.f32 1e-05, %v2040_v37  ;;  %v2103_v9 = vadd.f32 1e-05, %v2039_v27  ;;  %v4749_v28 = vld [vmem:[#allocation21_spill] sm:$0xff] }
 0x358   : > { %v2357_v26 = vadd.f32 %v4324_v22, %v2289_v5  ;;  %v2223_v2 = vmul.f32 %v3183_v31, %v4740_v18  ;;  %v1978_v63 = vpop.xlane.xlu1 %1977  ;;  %v1976_v12 = vpop.xlane.xlu0 %1975 }
 0x359   : > { %2422 = vst [vmem:[%s4333_s14 + $0x198] sm:$0xff] %v2358_v11  ;;  %v2292_v59 = vmul.f32 %v4322_v47, %v2224_v48  ;;  %3196 = vrsqrt.f32 %v2104_v57  ;;  %v2042_v52 = vmul.f32 0.03125, %v1978_v63  ;;  %v2041_v16 = vmul.f32 0.03125, %v1976_v12  ;;  %v4750_v11 = vld [vmem:[#allocation22_spill] sm:$0xff] }
 0x35a   : > { %v3185_v19 = vpop.eup %3184  ;;  %2421 = vst [vmem:[%s4333_s14 + $0x190] sm:$0xff] %v2357_v26  ;;  %v2291_v60 = vmul.f32 %v4322_v47, %v2223_v2  ;;  %3198 = vrsqrt.f32 %v2103_v9 }
 0x35b   : > { %v3187_v62 = vpop.eup %3186  ;;  %v2360_v56 = vadd.f32 %v4324_v22, %v2292_v59  ;;  %v2226_v23 = vmul.f32 %v3185_v19, %v4741_v39  ;;  %v2106_v35 = vadd.f32 1e-05, %v2042_v52  ;;  %v2105_v33 = vadd.f32 1e-05, %v2041_v16 }
 0x35c   : > { %v2359_v61 = vadd.f32 %v4324_v22, %v2291_v60  ;;  %v2225_v40 = vmul.f32 %v3187_v62, %v4742_v41 }
 0x35d   : > { %2424 = vst [vmem:[%s4333_s14 + $0x1a8] sm:$0xff] %v2360_v56  ;;  %v2294_v15 = vmul.f32 %v4322_v47, %v2226_v23  ;;  %3200 = vrsqrt.f32 %v2106_v35 }
 0x35e   : > { %v3189_v32 = vpop.eup %3188  ;;  %2423 = vst [vmem:[%s4333_s14 + $0x1a0] sm:$0xff] %v2359_v61  ;;  %v2293_v8 = vmul.f32 %v4322_v47, %v2225_v40  ;;  %3202 = vrsqrt.f32 %v2105_v33 }
 0x35f   : > { %v3191_v7 = vpop.eup %3190  ;;  %v2362_v36 = vadd.f32 %v4324_v22, %v2294_v15  ;;  %v2228_v43 = vmul.f32 %v3189_v32, %v4743_v17 }
 0x360   : > { %v2361_v4 = vadd.f32 %v4324_v22, %v2293_v8  ;;  %v2227_v49 = vmul.f32 %v3191_v7, %v4744_v42 }
 0x361   : > { %2426 = vst [vmem:[%s4333_s14 + $0x1b8] sm:$0xff] %v2362_v36  ;;  %v2296_v20 = vmul.f32 %v4322_v47, %v2228_v43 }
 0x362   : > { %v3193_v46 = vpop.eup %3192  ;;  %2425 = vst [vmem:[%s4333_s14 + $0x1b0] sm:$0xff] %v2361_v4  ;;  %v2295_v51 = vmul.f32 %v4322_v47, %v2227_v49 }
 0x363   : > { %v3195_v50 = vpop.eup %3194  ;;  %v2364_v13 = vadd.f32 %v4324_v22, %v2296_v20  ;;  %v2230_v29 = vmul.f32 %v3193_v46, %v4745_v45 }
 0x364   : > { %v2363_v58 = vadd.f32 %v4324_v22, %v2295_v51  ;;  %v2229_v3 = vmul.f32 %v3195_v50, %v4746_v25 }
 0x365   : > { %2428 = vst [vmem:[%s4333_s14 + $0x1c8] sm:$0xff] %v2364_v13  ;;  %v2298_v30 = vmul.f32 %v4322_v47, %v2230_v29 }
 0x366   : > { %v3197_v6 = vpop.eup %3196  ;;  %2427 = vst [vmem:[%s4333_s14 + $0x1c0] sm:$0xff] %v2363_v58  ;;  %v2297_v53 = vmul.f32 %v4322_v47, %v2229_v3 }
 0x367   : > { %v3199_v24 = vpop.eup %3198  ;;  %v2366_v1 = vadd.f32 %v4324_v22, %v2298_v30  ;;  %v2232_v0 = vmul.f32 %v3197_v6, %v4747_v10 }
 0x368   : > { %v2365_v54 = vadd.f32 %v4324_v22, %v2297_v53  ;;  %v2231_v34 = vmul.f32 %v3199_v24, %v4748_v38 }
 0x369   : > { %2430 = vst [vmem:[%s4333_s14 + $0x1d8] sm:$0xff] %v2366_v1  ;;  %v2300_v21 = vmul.f32 %v4322_v47, %v2232_v0 }
 0x36a   : > { %v3201_v14 = vpop.eup %3200  ;;  %2429 = vst [vmem:[%s4333_s14 + $0x1d0] sm:$0xff] %v2365_v54  ;;  %v2299_v55 = vmul.f32 %v4322_v47, %v2231_v34 }
 0x36b   : > { %v3203_v37 = vpop.eup %3202  ;;  %v2368_v27 = vadd.f32 %v4324_v22, %v2300_v21  ;;  %v2234_v5 = vmul.f32 %v3201_v14, %v4749_v28 }
 0x36c   : > { %v2367_v31 = vadd.f32 %v4324_v22, %v2299_v55  ;;  %v2233_v44 = vmul.f32 %v3203_v37, %v4750_v11 }
 0x36d   : > { %2432 = vst [vmem:[%s4333_s14 + $0x1e8] sm:$0xff] %v2368_v27  ;;  %v2302_v48 = vmul.f32 %v4322_v47, %v2234_v5 }
 0x36e   : > { %2431 = vst [vmem:[%s4333_s14 + $0x1e0] sm:$0xff] %v2367_v31  ;;  %v2301_v57 = vmul.f32 %v4322_v47, %v2233_v44 }
 0x36f   : > { %v2370_v9 = vadd.f32 %v4324_v22, %v2302_v48 }
 0x370   : > { %v2369_v26 = vadd.f32 %v4324_v22, %v2301_v57 }
 0x371   : > { %2434 = vst [vmem:[%s4333_s14 + $0x1f8] sm:$0xff] %v2370_v9 }
 0x372   : > { %2433 = vst [vmem:[%s4333_s14 + $0x1f0] sm:$0xff] %v2369_v26 }
 0x373   : > { %3230 = shalt.err (!%p3227_p13)
}
 0x374   : > { %s3231_s29 = scalar_lea.hbm %s4588_s19, 8192  ;;  %s3235_s10 = scalar_lea.hbm %s4642_s5, 16384 }
 0x375   : > { %p3232_p0 = scmp.ne.s32.totalorder %s4588_s19, %s3231_s29  ;;  %p3236_p3 = scmp.lt.s32.totalorder %s4588_s19, %s4642_s5 }
 0x376   : > { %p3237_p4 = scmp.lt.s32.totalorder %s3235_s10, %s3231_s29 }
 0x377   : > { %p3233_p1 = pnand %p3232_p0, %p3357_p10 }
 0x378   : > { %p3238_p5 = por %p3237_p4, %p3236_p3 }
 0x379   : > { %p3234_p2 = pneg %p3233_p1 }
 0x37b   : > { %p3239_p6 = pnand %p3238_p5, %p3234_p2 }
 0x37d   : > { %3242 = shalt.err (!%p3239_p6)
}
 0x37e   : > { %s3284_s13 = smov 128   ;;  %s3285_s14 = smov 8  }
 0x37f   : > { %3033 = dma.vmem_to_hbm [thread:$0]  (%p3357_p10), %s4590_s16, 8192, %s4588_s19, %s4597_s26, %s3284_s13, %s3284_s13, %s3285_s14  }
 0x380 PF: > { %p3039_p7 = scmp.ge.s32.totalorder %s3279_s25, 2  ;;  %s2464_s15 = sand.u32 1, %s3267_s23  }
 0x381   : > { %s2465_s17 = scalar_lea.sflag [#allocation5], %s2464_s15 }
 0x382   : > { %p3036_p8 = pnand %p3039_p7, %p3361_p11 }
 0x384   : > { %p3037_p9 = pneg %p3036_p8 }
 0x386   : > { %3262 = dma.done.wait (%p3037_p9), %s2465_s17, 8192  }
 0x387   : > { %3264 = vsyncadd (%p3037_p9), %s2465_s17, 4294959104  ;;  %p21_p12 = scmp.ge.s32.totalorder %s3344_s28, 4   ;;  %s4751_s23 = smov %s3271_s24 }
 0x388   : > { %s4752_s24 = smov %s3275_s0  ;;  %s4753_s0 = smov %s3355_s6 }
 0x389   : > { %s4754_s25 = smov %s3344_s28  ;;  %23 = sbr.rel (!%p21_p12) target bundleno = 18 (0x12), region = 80 }
 0x38e   :  { %2470 = vsyncpa [#allocation5], 1 }
 0x38f   :  { %2472 = vsyncpa [#allocation5 + $0x1], 1 }

</bundles_post_ra>
